<compile_context>
chip_gen: v7x
topology: tpu7x:2x2x1
jax: 0.10.0
libtpu: 0.0.40
codegen_flags: <defaults>
</compile_context>

<pallas_src>
import functools

import jax
import jax.numpy as jnp
from jax.experimental import pallas as pl
from jax.experimental.pallas import tpu as pltpu


# Abramowitz & Stegun 4.4.47 minimax polynomial for arctan on [0, 1] (|err| <= 1e-5).
_ATAN_P = (0.9998660, -0.3302995, 0.1801410, -0.0851330, 0.0208351)


def _atan01(t):
    """arctan(t) for t in [0, 1] (tolerates t slightly > 1 from approx recip)."""
    z = t * t
    p = jnp.float32(_ATAN_P[-1])
    for c in _ATAN_P[-2::-1]:
        p = p * z + jnp.float32(c)
    return t * p


def _atan2(y, x):
    """torch.atan2 semantics (atan2(0, 0) == 0) from VPU selects + EUP reciprocal."""
    abs_y = jnp.abs(y)
    abs_x = jnp.abs(x)
    swap = abs_y > abs_x
    num = jnp.where(swap, abs_x, abs_y)
    den = jnp.where(swap, abs_y, abs_x)
    safe_den = jnp.where(den == 0.0, jnp.float32(1.0), den)
    t = num * pl.reciprocal(safe_den, approx=True)   # EUP slot, off the VALU path
    r = _atan01(t)
    r = jnp.where(swap, jnp.float32(jnp.pi / 2) - r, r)
    r = jnp.where(x < 0.0, jnp.float32(jnp.pi) - r, r)
    r = jnp.where(y < 0.0, -r, r)
    return r


def _spectral_kernel(ft_ref, fp_ref, dft_ref, out_ref, acc_ref):
    i = pl.program_id(1)

    @pl.when(i == 0)
    def _():
        acc_ref[...] = jnp.zeros_like(acc_ref)

    dft = dft_ref[...]                       # (n_fft, width): [win*cos | -win*sin]
    half = dft.shape[-1] // 2

    # One fused matmul per signal: lanes [0, half) = Re, lanes [half, width) = Im.
    st = jnp.dot(ft_ref[...], dft, preferred_element_type=jnp.float32)
    sp = jnp.dot(fp_ref[...], dft, preferred_element_type=jnp.float32)

    # Align Im with Re by a half-width lane rotation (XLU slot, ~free).
    st_sw = pltpu.roll(st, shift=half, axis=1)
    sp_sw = pltpu.roll(sp, shift=half, axis=1)

    mag_t = jnp.sqrt(st * st + st_sw * st_sw)
    mag_p = jnp.sqrt(sp * sp + sp_sw * sp_sw)
    ph_t = _atan2(st_sw, st)
    ph_p = _atan2(sp_sw, sp)

    # No per-step lane mask: lanes [half, width) hold finite "swapped-pair" garbage
    # that the JAX wrapper slices off; lanes [n_freq, half) and padded zero frames
    # contribute exactly 0. Per-step sublane reduction into a tiny (1, width) acc.
    diff = jnp.abs(mag_t - mag_p) + jnp.abs(ph_t - ph_p)
    acc_ref[...] += jnp.sum(diff, axis=0, keepdims=True)

    # Finalize once per core: store the lane-dense partial row.
    @pl.when(i == pl.num_programs(1) - 1)
    def _():
        out_ref[...] = acc_ref[...][None]


def _frame_signal(x, n_fft, hop):
    """torch.stft framing: center=True, reflect pad, frames of n_fft every hop."""
    t = x.shape[-1]
    x2 = x.reshape(-1, t)
    pad = n_fft // 2
    xp = jnp.pad(x2, ((0, 0), (pad, pad)), mode="reflect")
    num_frames = (xp.shape[-1] - n_fft) // hop + 1
    starts = jnp.arange(num_frames) * hop
    idx = starts[:, None] + jnp.arange(n_fft)[None, :]
    frames = xp[:, idx]                       # (signals, num_frames, n_fft)
    return frames.reshape(-1, n_fft).astype(jnp.float32), num_frames


def _fused_dft_matrix(n_fft, half):
    """[win*norm*cos | -win*norm*sin] packed along lanes: (n_fft, 2*half)."""
    n_freq = n_fft // 2 + 1
    n = jnp.arange(n_fft, dtype=jnp.float32)[:, None]
    f = jnp.arange(n_freq, dtype=jnp.float32)[None, :]
    ang = 2.0 * jnp.pi * n * f / n_fft
    window = 0.5 * (1.0 - jnp.cos(2.0 * jnp.pi * jnp.arange(n_fft, dtype=jnp.float32) / n_fft))
    scale = (window / jnp.sqrt(jnp.float32(n_fft)))[:, None]
    cos_m = jnp.pad(scale * jnp.cos(ang), ((0, 0), (0, half - n_freq)))
    nsin_m = jnp.pad(-scale * jnp.sin(ang), ((0, 0), (0, half - n_freq)))
    return jnp.concatenate([cos_m, nsin_m], axis=-1).astype(jnp.float32)


@functools.lru_cache(maxsize=None)
def _num_tensorcores() -> int:
    """Best-effort TensorCores-per-device (v7x/megacore: 2; v5e/v6e: 1)."""
    try:
        dev = jax.devices()[0]
    except Exception:
        return 1
    for attr in ("num_cores", "num_tensorcores", "core_count"):
        n = getattr(dev, attr, None)
        if isinstance(n, int) and 1 <= n <= 8:
            return min(n, 2)
    return 1


def _round_up(x, m):
    return ((x + m - 1) // m) * m


@functools.partial(jax.jit, static_argnames=("n_fft", "hop", "frame_tile"))
def spectral_loss(target, predict, n_fft=64, hop=None, frame_tile=4096):
    hop = hop or n_fft // 4
    n_freq = n_fft // 2 + 1
    # Pack Re|Im along lanes; for n_fft <= 128 this is one 128-lane group.
    half = 64 if n_freq <= 64 else ((n_freq + 127) // 128) * 128
    width = 2 * half

    ft, _ = _frame_signal(target, n_fft, hop)
    fp, _ = _frame_signal(predict, n_fft, hop)
    total_frames = ft.shape[0]

    num_cores = _num_tensorcores()   # 1 on v5e/v6e -> no wasted padding / grid steps

    # Clamp the frame tile to (a) the useful amount of work and (b) a double-
    # buffered VMEM budget: 2 signals x 2 pipeline buffers x tile x n_fft x 4B + DFT.
    dft_bytes = 2 * n_fft * width * 4
    per_row_bytes = 2 * 2 * n_fft * 4
    budget_bytes = 24 << 20
    tile_cap = max(8, (budget_bytes - dft_bytes) // per_row_bytes)
    frame_tile = max(8, min(frame_tile, tile_cap, _round_up(total_frames, 8)))
    frame_tile = (frame_tile // 8) * 8

    pad_rows = (-total_frames) % (frame_tile * num_cores)
    ft = jnp.pad(ft, ((0, pad_rows), (0, 0)))   # zero frames contribute exactly 0
    fp = jnp.pad(fp, ((0, pad_rows), (0, 0)))
    n_tiles_per_core = ft.shape[0] // (frame_tile * num_cores)

    dft = _fused_dft_matrix(n_fft, half)

    frame_spec = pl.BlockSpec(
        (frame_tile, n_fft), lambda c, i: (c * n_tiles_per_core + i, 0))

    needed_bytes = per_row_bytes * frame_tile + dft_bytes + (1 << 20)
    vmem_limit = int(min(48 << 20, max(32 << 20, 2 * needed_bytes)))

    partial = pl.pallas_call(
        _spectral_kernel,
        out_shape=jax.ShapeDtypeStruct((num_cores, 1, width), jnp.float32),
        grid_spec=pltpu.PrefetchScalarGridSpec(
            num_scalar_prefetch=0,
            grid=(num_cores, n_tiles_per_core),
            in_specs=[
                frame_spec,
                frame_spec,
                pl.BlockSpec((n_fft, width), lambda c, i: (0, 0)),
            ],
            out_specs=pl.BlockSpec((1, 1, width), lambda c, i: (c, 0, 0)),
            scratch_shapes=[pltpu.VMEM((1, width), jnp.float32)],
        ),
        compiler_params=pltpu.CompilerParams(
            dimension_semantics=("parallel", "arbitrary"),
            vmem_limit_bytes=vmem_limit),
    )(ft, fp, dft)

    # F.l1_loss means over batch*channels*n_freq*n_frames (same N for both terms).
    # Slice off the swapped/garbage upper-half lanes here (moved out of the kernel).
    n_elems = jnp.float32(total_frames * n_freq)
    return jnp.sum(partial[..., :n_freq]) / n_elems


if __name__ == "__main__":
    key = jax.random.PRNGKey(0)
    k1, k2 = jax.random.split(key)
    B, C, T = 2, 2, 256           # (batch, channels, time)
    n_fft, hop = 64, 16           # small STFT consistent with Stft(n_fft, hop=n_fft//4)

    target = jax.random.normal(k1, (B, C, T), dtype=jnp.float32)
    predict = jax.random.normal(k2, (B, C, T), dtype=jnp.float32)

    loss = spectral_loss(target, predict, n_fft=n_fft, hop=hop)
    loss = jax.block_until_ready(loss)

    # Pure-JAX reference (rfft-based STFT, same torch.stft semantics).
    def _ref_mag_phase(x):
        fr, _ = _frame_signal(x, n_fft, hop)
        win = 0.5 * (1.0 - jnp.cos(2.0 * jnp.pi * jnp.arange(n_fft, dtype=jnp.float32) / n_fft))
        spec = jnp.fft.rfft(fr * win, n=n_fft) / jnp.sqrt(jnp.float32(n_fft))
        return jnp.abs(spec), jnp.arctan2(spec.imag, spec.real)

    mt, pt = _ref_mag_phase(target)
    mp_, pp = _ref_mag_phase(predict)
    ref = jnp.mean(jnp.abs(mt - mp_)) + jnp.mean(jnp.abs(pt - pp))

    assert abs(float(loss) - float(ref)) <= 1e-2 + 1e-2 * abs(float(ref)), (float(loss), float(ref))
    print("KERNEL_OK")
</pallas_src>

<mosaic_0001>
module attributes {stable_mosaic.version = 11 : i64} {
  func.func @_spectral_kernel(%arg0: i32, %arg1: i32, %arg2: memref<72x64xf32, #tpu.memory_space<vmem>>, %arg3: memref<72x64xf32, #tpu.memory_space<vmem>>, %arg4: memref<64x128xf32, #tpu.memory_space<vmem>>, %arg5: memref<1x1x128xf32, #tpu.memory_space<vmem>>, %arg6: memref<1x128xf32, #tpu.memory_space<vmem>>) attributes {dimension_semantics = [#tpu.dimension_semantics<parallel>, #tpu.dimension_semantics<arbitrary>], iteration_bounds = array<i64: 1, 1>, scalar_prefetch = 0 : i64, scratch_operands = 1 : i64, tpu.core_type = #tpu.core_type<tc>, window_params = [{transform_indices = @transform_0, window_bounds = array<i64: 72, 64>}, {transform_indices = @transform_1, window_bounds = array<i64: 72, 64>}, {pipeline_mode = #tpu.pipeline_mode<synchronous>, transform_indices = @transform_2, window_bounds = array<i64: 64, 128>}, {transform_indices = @transform_3, window_bounds = array<i64: 1, 1, 128>}]} {
    %c0_i32 = arith.constant 0 : i32
    %0 = arith.cmpi eq, %arg1, %c0_i32 : i32
    %1 = arith.extui %0 : i1 to i32
    %c0_i32_0 = arith.constant 0 : i32
    %2 = arith.cmpi ne, %1, %c0_i32_0 : i32
    scf.if %2 {
      %cst_39 = arith.constant 0.000000e+00 : f32
      %109 = vector.broadcast %cst_39 : f32 to vector<1x128xf32>
      %c0_40 = arith.constant 0 : index
      %c0_41 = arith.constant 0 : index
      %110 = vector.load %arg6[%c0_40, %c0_41] : memref<1x128xf32, #tpu.memory_space<vmem>>, vector<1x128xf32>
      tpu.vector_store %arg6[%c0_40, %c0_41], %109 {strides = array<i32>} : memref<1x128xf32, #tpu.memory_space<vmem>>, vector<1x128xf32>,
    } else {
    }
    %c0 = arith.constant 0 : index
    %c0_1 = arith.constant 0 : index
    %3 = vector.load %arg4[%c0, %c0_1] : memref<64x128xf32, #tpu.memory_space<vmem>>, vector<64x128xf32>
    %c0_2 = arith.constant 0 : index
    %c0_3 = arith.constant 0 : index
    %4 = vector.load %arg2[%c0_2, %c0_3] : memref<72x64xf32, #tpu.memory_space<vmem>>, vector<72x64xf32>
    %cst = arith.constant dense<0.000000e+00> : vector<72x128xf32>
    %5 = tpu.matmul %4, %3, %cst {dimension_numbers = #tpu.dot_dimension_numbers<[1], [0], [0], [1], [0, 0, 1, 1], [], []>} : vector<72x64xf32>, vector<64x128xf32>, vector<72x128xf32> -> vector<72x128xf32>
    %c0_4 = arith.constant 0 : index
    %c0_5 = arith.constant 0 : index
    %6 = vector.load %arg3[%c0_4, %c0_5] : memref<72x64xf32, #tpu.memory_space<vmem>>, vector<72x64xf32>
    %cst_6 = arith.constant dense<0.000000e+00> : vector<72x128xf32>
    %7 = tpu.matmul %6, %3, %cst_6 {dimension_numbers = #tpu.dot_dimension_numbers<[1], [0], [0], [1], [0, 0, 1, 1], [], []>} : vector<72x64xf32>, vector<64x128xf32>, vector<72x128xf32> -> vector<72x128xf32>
    %c64_i32 = arith.constant 64 : i32
    %8 = tpu.dynamic_rotate %5 by %c64_i32 dim 1 : vector<72x128xf32>, i32 -> vector<72x128xf32>
    %c64_i32_7 = arith.constant 64 : i32
    %9 = tpu.dynamic_rotate %7 by %c64_i32_7 dim 1 : vector<72x128xf32>, i32 -> vector<72x128xf32>
    %10 = arith.mulf %5, %5 : vector<72x128xf32>
    %11 = arith.mulf %8, %8 : vector<72x128xf32>
    %12 = arith.addf %10, %11 : vector<72x128xf32>
    %13 = math.sqrt %12 : vector<72x128xf32>
    %14 = arith.mulf %7, %7 : vector<72x128xf32>
    %15 = arith.mulf %9, %9 : vector<72x128xf32>
    %16 = arith.addf %14, %15 : vector<72x128xf32>
    %17 = math.sqrt %16 : vector<72x128xf32>
    %18 = math.absf %8 : vector<72x128xf32>
    %19 = math.absf %5 : vector<72x128xf32>
    %20 = arith.cmpf ogt, %18, %19 : vector<72x128xf32>
    %21 = arith.select %20, %19, %18 : vector<72x128xi1>, vector<72x128xf32>
    %22 = arith.select %20, %18, %19 : vector<72x128xi1>, vector<72x128xf32>
    %cst_8 = arith.constant 0.000000e+00 : f32
    %23 = vector.broadcast %cst_8 : f32 to vector<72x128xf32>
    %24 = arith.cmpf oeq, %22, %23 : vector<72x128xf32>
    %cst_9 = arith.constant 1.000000e+00 : f32
    %25 = vector.broadcast %cst_9 : f32 to vector<72x128xf32>
    %26 = arith.select %24, %25, %22 : vector<72x128xi1>, vector<72x128xf32>
    %27 = tpu.reciprocal %26 {approx = true} : vector<72x128xf32> -> vector<72x128xf32>
    %28 = arith.mulf %21, %27 : vector<72x128xf32>
    %29 = arith.mulf %28, %28 : vector<72x128xf32>
    %cst_10 = arith.constant 2.083510e-02 : f32
    %30 = vector.broadcast %cst_10 : f32 to vector<72x128xf32>
    %31 = arith.mulf %30, %29 : vector<72x128xf32>
    %cst_11 = arith.constant -8.513300e-02 : f32
    %32 = vector.broadcast %cst_11 : f32 to vector<72x128xf32>
    %33 = arith.addf %31, %32 : vector<72x128xf32>
    %34 = arith.mulf %33, %29 : vector<72x128xf32>
    %cst_12 = arith.constant 1.801410e-01 : f32
    %35 = vector.broadcast %cst_12 : f32 to vector<72x128xf32>
    %36 = arith.addf %34, %35 : vector<72x128xf32>
    %37 = arith.mulf %36, %29 : vector<72x128xf32>
    %cst_13 = arith.constant -0.330299497 : f32
    %38 = vector.broadcast %cst_13 : f32 to vector<72x128xf32>
    %39 = arith.addf %37, %38 : vector<72x128xf32>
    %40 = arith.mulf %39, %29 : vector<72x128xf32>
    %cst_14 = arith.constant 9.998660e-01 : f32
    %41 = vector.broadcast %cst_14 : f32 to vector<72x128xf32>
    %42 = arith.addf %40, %41 : vector<72x128xf32>
    %43 = arith.mulf %28, %42 : vector<72x128xf32>
    %cst_15 = arith.constant 1.57079637 : f32
    %44 = vector.broadcast %cst_15 : f32 to vector<72x128xf32>
    %45 = arith.subf %44, %43 : vector<72x128xf32>
    %46 = arith.select %20, %45, %43 : vector<72x128xi1>, vector<72x128xf32>
    %cst_16 = arith.constant 0.000000e+00 : f32
    %47 = vector.broadcast %cst_16 : f32 to vector<72x128xf32>
    %48 = arith.cmpf olt, %5, %47 : vector<72x128xf32>
    %cst_17 = arith.constant 3.14159274 : f32
    %49 = vector.broadcast %cst_17 : f32 to vector<72x128xf32>
    %50 = arith.subf %49, %46 : vector<72x128xf32>
    %51 = arith.select %48, %50, %46 : vector<72x128xi1>, vector<72x128xf32>
    %cst_18 = arith.constant 0.000000e+00 : f32
    %52 = vector.broadcast %cst_18 : f32 to vector<72x128xf32>
    %53 = arith.cmpf olt, %8, %52 : vector<72x128xf32>
    %cst_19 = arith.constant 0.000000e+00 : f32
    %54 = vector.broadcast %cst_19 : f32 to vector<72x128xf32>
    %55 = arith.subf %54, %51 : vector<72x128xf32>
    %56 = arith.select %53, %55, %51 : vector<72x128xi1>, vector<72x128xf32>
    %57 = math.absf %9 : vector<72x128xf32>
    %58 = math.absf %7 : vector<72x128xf32>
    %59 = arith.cmpf ogt, %57, %58 : vector<72x128xf32>
    %60 = arith.select %59, %58, %57 : vector<72x128xi1>, vector<72x128xf32>
    %61 = arith.select %59, %57, %58 : vector<72x128xi1>, vector<72x128xf32>
    %cst_20 = arith.constant 0.000000e+00 : f32
    %62 = vector.broadcast %cst_20 : f32 to vector<72x128xf32>
    %63 = arith.cmpf oeq, %61, %62 : vector<72x128xf32>
    %cst_21 = arith.constant 1.000000e+00 : f32
    %64 = vector.broadcast %cst_21 : f32 to vector<72x128xf32>
    %65 = arith.select %63, %64, %61 : vector<72x128xi1>, vector<72x128xf32>
    %66 = tpu.reciprocal %65 {approx = true} : vector<72x128xf32> -> vector<72x128xf32>
    %67 = arith.mulf %60, %66 : vector<72x128xf32>
    %68 = arith.mulf %67, %67 : vector<72x128xf32>
    %cst_22 = arith.constant 2.083510e-02 : f32
    %69 = vector.broadcast %cst_22 : f32 to vector<72x128xf32>
    %70 = arith.mulf %69, %68 : vector<72x128xf32>
    %cst_23 = arith.constant -8.513300e-02 : f32
    %71 = vector.broadcast %cst_23 : f32 to vector<72x128xf32>
    %72 = arith.addf %70, %71 : vector<72x128xf32>
    %73 = arith.mulf %72, %68 : vector<72x128xf32>
    %cst_24 = arith.constant 1.801410e-01 : f32
    %74 = vector.broadcast %cst_24 : f32 to vector<72x128xf32>
    %75 = arith.addf %73, %74 : vector<72x128xf32>
    %76 = arith.mulf %75, %68 : vector<72x128xf32>
    %cst_25 = arith.constant -0.330299497 : f32
    %77 = vector.broadcast %cst_25 : f32 to vector<72x128xf32>
    %78 = arith.addf %76, %77 : vector<72x128xf32>
    %79 = arith.mulf %78, %68 : vector<72x128xf32>
    %cst_26 = arith.constant 9.998660e-01 : f32
    %80 = vector.broadcast %cst_26 : f32 to vector<72x128xf32>
    %81 = arith.addf %79, %80 : vector<72x128xf32>
    %82 = arith.mulf %67, %81 : vector<72x128xf32>
    %cst_27 = arith.constant 1.57079637 : f32
    %83 = vector.broadcast %cst_27 : f32 to vector<72x128xf32>
    %84 = arith.subf %83, %82 : vector<72x128xf32>
    %85 = arith.select %59, %84, %82 : vector<72x128xi1>, vector<72x128xf32>
    %cst_28 = arith.constant 0.000000e+00 : f32
    %86 = vector.broadcast %cst_28 : f32 to vector<72x128xf32>
    %87 = arith.cmpf olt, %7, %86 : vector<72x128xf32>
    %cst_29 = arith.constant 3.14159274 : f32
    %88 = vector.broadcast %cst_29 : f32 to vector<72x128xf32>
    %89 = arith.subf %88, %85 : vector<72x128xf32>
    %90 = arith.select %87, %89, %85 : vector<72x128xi1>, vector<72x128xf32>
    %cst_30 = arith.constant 0.000000e+00 : f32
    %91 = vector.broadcast %cst_30 : f32 to vector<72x128xf32>
    %92 = arith.cmpf olt, %9, %91 : vector<72x128xf32>
    %cst_31 = arith.constant 0.000000e+00 : f32
    %93 = vector.broadcast %cst_31 : f32 to vector<72x128xf32>
    %94 = arith.subf %93, %90 : vector<72x128xf32>
    %95 = arith.select %92, %94, %90 : vector<72x128xi1>, vector<72x128xf32>
    %96 = arith.subf %13, %17 : vector<72x128xf32>
    %97 = math.absf %96 : vector<72x128xf32>
    %98 = arith.subf %56, %95 : vector<72x128xf32>
    %99 = math.absf %98 : vector<72x128xf32>
    %100 = arith.addf %97, %99 : vector<72x128xf32>
    %c0_32 = arith.constant 0 : index
    %c0_33 = arith.constant 0 : index
    %101 = vector.load %arg6[%c0_32, %c0_33] : memref<1x128xf32, #tpu.memory_space<vmem>>, vector<1x128xf32>
    %cst_34 = arith.constant dense<0.000000e+00> : vector<128xf32>
    %102 = vector.multi_reduction <add>, %100, %cst_34 [0] : vector<72x128xf32> to vector<128xf32>
    %103 = vector.shape_cast %102 : vector<128xf32> to vector<1x128xf32>
    %104 = arith.addf %101, %103 : vector<1x128xf32>
    %c0_35 = arith.constant 0 : index
    %c0_36 = arith.constant 0 : index
    %105 = vector.load %arg6[%c0_35, %c0_36] : memref<1x128xf32, #tpu.memory_space<vmem>>, vector<1x128xf32>
    tpu.vector_store %arg6[%c0_35, %c0_36], %104 {strides = array<i32>} : memref<1x128xf32, #tpu.memory_space<vmem>>, vector<1x128xf32>,
    %c0_i32_37 = arith.constant 0 : i32
    %106 = arith.cmpi eq, %arg1, %c0_i32_37 : i32
    %107 = arith.extui %106 : i1 to i32
    %c0_i32_38 = arith.constant 0 : i32
    %108 = arith.cmpi ne, %107, %c0_i32_38 : i32
    scf.if %108 {
      %c0_39 = arith.constant 0 : index
      %c0_40 = arith.constant 0 : index
      %109 = vector.load %arg6[%c0_39, %c0_40] : memref<1x128xf32, #tpu.memory_space<vmem>>, vector<1x128xf32>
      %110 = vector.shape_cast %109 : vector<1x128xf32> to vector<1x1x128xf32>
      %c0_41 = arith.constant 0 : index
      %c0_42 = arith.constant 0 : index
      %c0_43 = arith.constant 0 : index
      %111 = vector.load %arg5[%c0_41, %c0_42, %c0_43] : memref<1x1x128xf32, #tpu.memory_space<vmem>>, vector<1x1x128xf32>
      tpu.vector_store %arg5[%c0_41, %c0_42, %c0_43], %110 {strides = array<i32>} : memref<1x1x128xf32, #tpu.memory_space<vmem>>, vector<1x1x128xf32>,
    } else {
    }
    return
  }
  func.func @transform_0(%arg0: i32, %arg1: i32) -> (i32, i32) {
    %c1_i32 = arith.constant 1 : i32
    %0 = arith.muli %arg0, %c1_i32 : i32
    %1 = arith.addi %0, %arg1 : i32
    %c0_i32 = arith.constant 0 : i32
    %c0_i32_0 = arith.constant 0 : i32
    return %1, %c0_i32 : i32, i32
  }
  func.func @transform_1(%arg0: i32, %arg1: i32) -> (i32, i32) {
    %c1_i32 = arith.constant 1 : i32
    %0 = arith.muli %arg0, %c1_i32 : i32
    %1 = arith.addi %0, %arg1 : i32
    %c0_i32 = arith.constant 0 : i32
    %c0_i32_0 = arith.constant 0 : i32
    return %1, %c0_i32 : i32, i32
  }
  func.func @transform_2(%arg0: i32, %arg1: i32) -> (i32, i32) {
    %c0_i32 = arith.constant 0 : i32
    %c0_i32_0 = arith.constant 0 : i32
    %c0_i32_1 = arith.constant 0 : i32
    return %c0_i32, %c0_i32_0 : i32, i32
  }
  func.func @transform_3(%arg0: i32, %arg1: i32) -> (i32, i32, i32) {
    %c0_i32 = arith.constant 0 : i32
    %c0_i32_0 = arith.constant 0 : i32
    %c0_i32_1 = arith.constant 0 : i32
    return %arg0, %c0_i32, %c0_i32_0 : i32, i32, i32
  }
}

</mosaic_0001>

<bundles_post_ra>
// kernel: spectral_loss.1
= control target key start
LH: loop header
LB: loop body
LE: loop exit
PB: predicated region body
PF: predicated region fallthrough
CT: control target
= control target key end

     0   :  { %v1387_v0 = vmov 0.0|0.0   ;;  %v1388_v4 = vmov 0.0   ;;  %vm1389_vm0 = vmmov 0   ;;  %vm80_vm1 = vcmask 523264   ;;  %s1390_s8 = smov 64   ;;  %s2638_s2 = inlined_call_operand.vmem [shape: f32[64,128], index: 2, kind: input, shape index: {}]   ;;  %s2639_s0 = inlined_call_operand.vmem [shape: f32[72,64], index: 0, kind: input, shape index: {}]   ;;  %s2640_s1 = inlined_call_operand.vmem [shape: f32[72,64], index: 1, kind: input, shape index: {}]   ;;  %s2641_s3 = inlined_call_operand.vmem [shape: f32[1,1,128], index: 3, kind: output, shape index: {}]  }
   0x1   :  { %1287 = vmatprep.subr.bf16.mxu0 %v1387_v0  ;;  %1299 = vmatprep.subr.bf16.mxu1 %v1387_v0  ;;  %v63_v1 = vld [vmem:[%s2638_s2] sm:$0xff]  ;;  %v64_v2 = vld [vmem:[%s2638_s2 + $0x8] sm:$0xff]  ;;  %v65_v3 = vld [vmem:[%s2638_s2 + $0x10] sm:$0xff]  ;;  %62 = vst [vmem:[#allocation2] sm:$0x1] %v1388_v4 }
   0x2   :  { %v1288_v5 = vpack.c.bf16 %v64_v2, %v63_v1  ;;  %v66_v6 = vld [vmem:[%s2638_s2 + $0x18] sm:$0xff]  ;;  %1217 = vmatprep.mubr.msk.f32.mxu0 %vm1389_vm0, %v1388_v4  ;;  %1260 = vmatprep.mubr.msk.f32.mxu1 %vm1389_vm0, %v1388_v4  ;;  %v67_v8 = vld [vmem:[%s2638_s2 + $0x20] sm:$0xff]  ;;  %v68_v9 = vld [vmem:[%s2638_s2 + $0x28] sm:$0xff] }
   0x3   :  { %v1291_v7 = vpack.c.bf16 %v66_v6, %v65_v3  ;;  %v1294_v10 = vpack.c.bf16 %v68_v9, %v67_v8  ;;  %v69_v11 = vld [vmem:[%s2638_s2 + $0x30] sm:$0xff]  ;;  %v70_v12 = vld [vmem:[%s2638_s2 + $0x38] sm:$0xff]  ;;  %v71_v14 = vld [vmem:[%s2639_s0] sm:$0xff] }
   0x4   :  { %1289 = vmatpush3.bf16.msra.mxu0 %v1288_v5  ;;  %1301 = vmatpush3.bf16.msra.mxu1 %v1288_v5  ;;  %v1297_v13 = vpack.c.bf16 %v70_v12, %v69_v11  ;;  %v218_v15 = vld [vmem:[%s2640_s1] sm:$0xff]  ;;  %v72_v16 = vld [vmem:[%s2639_s0 + $0x8] sm:$0xff]  ;;  %v73_v18 = vld [vmem:[%s2639_s0 + $0x10] sm:$0xff] }
   0x5   :  { %1290 = vmatprep.subr.bf16.mxu0 %v1387_v0  ;;  %1302 = vmatprep.subr.bf16.mxu1 %v1387_v0  ;;  %v219_v17 = vld [vmem:[%s2640_s1 + $0x8] sm:$0xff]  ;;  %v220_v19 = vld [vmem:[%s2640_s1 + $0x10] sm:$0xff]  ;;  %v74_v20 = vld [vmem:[%s2639_s0 + $0x18] sm:$0xff] }
   0x6   :  { %v221_v21 = vld [vmem:[%s2640_s1 + $0x18] sm:$0xff]  ;;  %v75_v22 = vld [vmem:[%s2639_s0 + $0x20] sm:$0xff]  ;;  %v76_v24 = vld [vmem:[%s2639_s0 + $0x28] sm:$0xff] }
   0x7   :  { %v222_v23 = vld [vmem:[%s2640_s1 + $0x20] sm:$0xff]  ;;  %v223_v25 = vld [vmem:[%s2640_s1 + $0x28] sm:$0xff]  ;;  %v77_v26 = vld [vmem:[%s2639_s0 + $0x30] sm:$0xff] }
   0x8   :  { %1292 = vmatpush3.bf16.msra.mxu0 %v1291_v7  ;;  %1304 = vmatpush3.bf16.msra.mxu1 %v1291_v7  ;;  %v224_v27 = vld [vmem:[%s2640_s1 + $0x30] sm:$0xff]  ;;  %v78_v28 = vld [vmem:[%s2639_s0 + $0x38] sm:$0xff]  ;;  %v79_v30 = vld [vmem:[%s2639_s0 + $0x40] sm:$0xff] }
   0x9   :  { %1293 = vmatprep.subr.bf16.mxu0 %v1387_v0  ;;  %1305 = vmatprep.subr.bf16.mxu1 %v1387_v0  ;;  %v225_v29 = vld [vmem:[%s2640_s1 + $0x38] sm:$0xff]  ;;  %v226_v31 = vld [vmem:[%s2640_s1 + $0x40] sm:$0xff] }
   0xc   :  { %1295 = vmatpush3.bf16.msra.mxu0 %v1294_v10  ;;  %1307 = vmatpush3.bf16.msra.mxu1 %v1294_v10 }
   0xd   :  { %1296 = vmatprep.subr.bf16.mxu0 %v1387_v0  ;;  %1308 = vmatprep.subr.bf16.mxu1 %v1387_v0 }
  0x10   :  { %1298 = vmatpush3.bf16.msra.mxu0 %v1297_v13  ;;  %1310 = vmatpush3.bf16.msra.mxu1 %v1297_v13 }
  0x13   :  { %1218 = vmatmul.mubr.msk.f32.vlgmr.msra.gmra.mrb[0].mxu0 %vm80_vm1, %v71_v14  ;;  %1261 = vmatmul.mubr.msk.f32.vlgmr.msra.gmra.mrb[0].mxu1 %vm80_vm1, %v218_v15 }
  0x14   :  { %1220 = vmatprep.mubr.msk.f32.mxu0 %vm1389_vm0, %v1388_v4  ;;  %1263 = vmatprep.mubr.msk.f32.mxu1 %vm1389_vm0, %v1388_v4 }
  0x17   :  { %1221 = vmatmul.mubr.msk.f32.gmra.mrb[2].mxu0 %vm80_vm1, %v72_v16  ;;  %1264 = vmatmul.mubr.msk.f32.gmra.mrb[2].mxu1 %vm80_vm1, %v219_v17 }
  0x18   :  { %1223 = vmatprep.mubr.msk.f32.mxu0 %vm1389_vm0, %v1388_v4  ;;  %1266 = vmatprep.mubr.msk.f32.mxu1 %vm1389_vm0, %v1388_v4 }
  0x1b   :  { %1224 = vmatmul.mubr.msk.f32.gmra.mrb[4].mxu0 %vm80_vm1, %v73_v18  ;;  %1267 = vmatmul.mubr.msk.f32.gmra.mrb[4].mxu1 %vm80_vm1, %v220_v19 }
  0x1c   :  { %1226 = vmatprep.mubr.msk.f32.mxu0 %vm1389_vm0, %v1388_v4  ;;  %1269 = vmatprep.mubr.msk.f32.mxu1 %vm1389_vm0, %v1388_v4 }
  0x1f   :  { %1227 = vmatmul.mubr.msk.f32.gmra.mrb[6].mxu0 %vm80_vm1, %v74_v20  ;;  %1270 = vmatmul.mubr.msk.f32.gmra.mrb[6].mxu1 %vm80_vm1, %v221_v21 }
  0x20   :  { %1229 = vmatprep.mubr.msk.f32.mxu0 %vm1389_vm0, %v1388_v4  ;;  %1272 = vmatprep.mubr.msk.f32.mxu1 %vm1389_vm0, %v1388_v4 }
  0x23   :  { %1230 = vmatmul.mubr.msk.f32.gmra.mrb[8].mxu0 %vm80_vm1, %v75_v22  ;;  %1273 = vmatmul.mubr.msk.f32.gmra.mrb[8].mxu1 %vm80_vm1, %v222_v23 }
  0x24   :  { %1232 = vmatprep.mubr.msk.f32.mxu0 %vm1389_vm0, %v1388_v4  ;;  %1275 = vmatprep.mubr.msk.f32.mxu1 %vm1389_vm0, %v1388_v4 }
  0x27   :  { %1233 = vmatmul.mubr.msk.f32.gmra.mrb[10].mxu0 %vm80_vm1, %v76_v24  ;;  %1276 = vmatmul.mubr.msk.f32.gmra.mrb[10].mxu1 %vm80_vm1, %v223_v25 }
  0x28   :  { %1235 = vmatprep.mubr.msk.f32.mxu0 %vm1389_vm0, %v1388_v4  ;;  %1278 = vmatprep.mubr.msk.f32.mxu1 %vm1389_vm0, %v1388_v4 }
  0x2b   :  { %1236 = vmatmul.mubr.msk.f32.gmra.mrb[12].mxu0 %vm80_vm1, %v77_v26  ;;  %1279 = vmatmul.mubr.msk.f32.gmra.mrb[12].mxu1 %vm80_vm1, %v224_v27 }
  0x2c   :  { %1238 = vmatprep.mubr.msk.f32.mxu0 %vm1389_vm0, %v1388_v4  ;;  %1281 = vmatprep.mubr.msk.f32.mxu1 %vm1389_vm0, %v1388_v4 }
  0x2f   :  { %1239 = vmatmul.mubr.msk.f32.gmra.mrb[14].mxu0 %vm80_vm1, %v78_v28  ;;  %1282 = vmatmul.mubr.msk.f32.gmra.mrb[14].mxu1 %vm80_vm1, %v225_v29 }
  0x30   :  { %1241 = vmatprep.mubr.msk.f32.mxu0 %vm1389_vm0, %v1388_v4  ;;  %1284 = vmatprep.mubr.msk.f32.mxu1 %vm1389_vm0, %v1388_v4 }
  0x33   :  { %1242 = vmatmul.mubr.msk.f32.gmra.mrb[16].mxu0 %vm80_vm1, %v79_v30  ;;  %1285 = vmatmul.mubr.msk.f32.gmra.mrb[16].mxu1 %vm80_vm1, %v226_v31 }
  0xe6   :  { %v1544_v32 = vpop.f32.mrb[0].mxu0  ;;  %v1546_v33 = vpop.f32.mrb[0].mxu1 }
  0xe7   :  { %382 = vrot.lane.b32.xlu1 %v1546_v33, %s1390_s8  ;;  %v1262_v34 = vpop.f32.mrb[1].mxu1  ;;  %364 = vrot.lane.b32.xlu0 %v1544_v32, %s1390_s8  ;;  %v1219_v35 = vpop.f32.mrb[1].mxu0  ;;  %v400_v4 = vmul.f32 %v1544_v32, %v1544_v32  ;;  %v1619_v5 = vand.u32 2147483647, %v1544_v32  ;;  %v490_v6 = vmul.f32 %v1546_v33, %v1546_v33  ;;  %v1624_v7 = vand.u32 2147483647, %v1546_v33 }
  0xea   :  { %v1552_v36 = vpop.f32.mrb[2].mxu0  ;;  %v1554_v37 = vpop.f32.mrb[2].mxu1 }
  0xeb   :  { %384 = vrot.lane.b32.xlu1 %v1554_v37, %s1390_s8  ;;  %v1265_v38 = vpop.f32.mrb[3].mxu1  ;;  %366 = vrot.lane.b32.xlu0 %v1552_v36, %s1390_s8  ;;  %v1222_v39 = vpop.f32.mrb[3].mxu0  ;;  %v401_v8 = vmul.f32 %v1552_v36, %v1552_v36  ;;  %v1629_v9 = vand.u32 2147483647, %v1552_v36  ;;  %v491_v10 = vmul.f32 %v1554_v37, %v1554_v37  ;;  %v1634_v11 = vand.u32 2147483647, %v1554_v37 }
  0xee   :  { %v1560_v40 = vpop.f32.mrb[4].mxu0  ;;  %v1562_v41 = vpop.f32.mrb[4].mxu1 }
  0xef   :  { %386 = vrot.lane.b32.xlu1 %v1562_v41, %s1390_s8  ;;  %v1268_v42 = vpop.f32.mrb[5].mxu1  ;;  %368 = vrot.lane.b32.xlu0 %v1560_v40, %s1390_s8  ;;  %v1225_v43 = vpop.f32.mrb[5].mxu0  ;;  %v1638_v12 = vmul.f32 %v1560_v40, %v1560_v40  ;;  %v1641_v13 = vand.u32 2147483647, %v1560_v40  ;;  %v1645_v14 = vmul.f32 %v1562_v41, %v1562_v41  ;;  %v1648_v15 = vand.u32 2147483647, %v1562_v41 }
  0xf2   :  { %v1568_v44 = vpop.f32.mrb[6].mxu0  ;;  %v1570_v45 = vpop.f32.mrb[6].mxu1 }
  0xf3   :  { %2670 = vst [vmem:[#allocation3_spill] sm:$0xff] %v1568_v44  ;;  %2671 = vst [vmem:[#allocation4_spill] sm:$0xff] %v1570_v45  ;;  %388 = vrot.lane.b32.xlu1 %v1570_v45, %s1390_s8  ;;  %v1271_v46 = vpop.f32.mrb[7].mxu1  ;;  %370 = vrot.lane.b32.xlu0 %v1568_v44, %s1390_s8  ;;  %v1228_v47 = vpop.f32.mrb[7].mxu0  ;;  %v1652_v16 = vmul.f32 %v1568_v44, %v1568_v44  ;;  %v1659_v19 = vand.u32 2147483647, %v1568_v44  ;;  %v1670_v23 = vmul.f32 %v1570_v45, %v1570_v45 }
  0xf4   :  { %v1673_v24 = vand.u32 2147483647, %v1570_v45 }
  0xf6   :  { %v1576_v48 = vpop.f32.mrb[8].mxu0  ;;  %v1578_v49 = vpop.f32.mrb[8].mxu1 }
  0xf7   :  { %2672 = vst [vmem:[#allocation5_spill] sm:$0xff] %v1576_v48  ;;  %2673 = vst [vmem:[#allocation6_spill] sm:$0xff] %v1578_v49  ;;  %390 = vrot.lane.b32.xlu1 %v1578_v49, %s1390_s8  ;;  %v1274_v50 = vpop.f32.mrb[9].mxu1  ;;  %372 = vrot.lane.b32.xlu0 %v1576_v48, %s1390_s8  ;;  %v1231_v51 = vpop.f32.mrb[9].mxu0  ;;  %v1677_v25 = vmul.f32 %v1576_v48, %v1576_v48  ;;  %v1683_v27 = vand.u32 2147483647, %v1576_v48  ;;  %v1693_v30 = vmul.f32 %v1578_v49, %v1578_v49 }
  0xf8   :  { %v1696_v31 = vand.u32 2147483647, %v1578_v49 }
  0xf9   :  { %2681 = vst [vmem:[#allocation14_spill] sm:$0xff] %v1677_v25  ;;  %2682 = vst [vmem:[#allocation15_spill] sm:$0xff] %v1683_v27 }
  0xfa   :  { %v1584_v52 = vpop.f32.mrb[10].mxu0  ;;  %v1586_v53 = vpop.f32.mrb[10].mxu1 }
  0xfb   :  { %2674 = vst [vmem:[#allocation7_spill] sm:$0xff] %v1584_v52  ;;  %2675 = vst [vmem:[#allocation8_spill] sm:$0xff] %v1586_v53  ;;  %392 = vrot.lane.b32.xlu1 %v1586_v53, %s1390_s8  ;;  %v1277_v54 = vpop.f32.mrb[11].mxu1  ;;  %374 = vrot.lane.b32.xlu0 %v1584_v52, %s1390_s8  ;;  %v1234_v55 = vpop.f32.mrb[11].mxu0  ;;  %v1700_v34 = vmul.f32 %v1584_v52, %v1584_v52  ;;  %v1710_v39 = vand.u32 2147483647, %v1584_v52  ;;  %v1717_v42 = vmul.f32 %v1586_v53, %v1586_v53 }
  0xfc   :  { %v1720_v43 = vand.u32 2147483647, %v1586_v53 }
  0xfd   :  { %2683 = vst [vmem:[#allocation16_spill] sm:$0xff] %v1700_v34  ;;  %2684 = vst [vmem:[#allocation17_spill] sm:$0xff] %v1710_v39 }
  0xfe   :  { %v1592_v56 = vpop.f32.mrb[12].mxu0  ;;  %v1594_v57 = vpop.f32.mrb[12].mxu1  ;;  %2685 = vst [vmem:[#allocation18_spill] sm:$0xff] %v1717_v42  ;;  %2686 = vst [vmem:[#allocation19_spill] sm:$0xff] %v1720_v43 }
  0xff   :  { %2676 = vst [vmem:[#allocation9_spill] sm:$0xff] %v1592_v56  ;;  %2677 = vst [vmem:[#allocation10_spill] sm:$0xff] %v1594_v57  ;;  %394 = vrot.lane.b32.xlu1 %v1594_v57, %s1390_s8  ;;  %v1280_v58 = vpop.f32.mrb[13].mxu1  ;;  %376 = vrot.lane.b32.xlu0 %v1592_v56, %s1390_s8  ;;  %v1237_v59 = vpop.f32.mrb[13].mxu0  ;;  %v1727_v50 = vmul.f32 %v1592_v56, %v1592_v56  ;;  %v1730_v51 = vand.u32 2147483647, %v1592_v56  ;;  %v1734_v54 = vmul.f32 %v1594_v57, %v1594_v57 }
 0x100   :  { %v1737_v55 = vand.u32 2147483647, %v1594_v57 }
 0x101   :  { %2687 = vst [vmem:[#allocation20_spill] sm:$0xff] %v1727_v50  ;;  %2688 = vst [vmem:[#allocation21_spill] sm:$0xff] %v1730_v51 }
 0x102   :  { %v1600_v60 = vpop.f32.mrb[14].mxu0  ;;  %v1602_v61 = vpop.f32.mrb[14].mxu1  ;;  %2689 = vst [vmem:[#allocation22_spill] sm:$0xff] %v1734_v54  ;;  %2690 = vst [vmem:[#allocation23_spill] sm:$0xff] %v1737_v55 }
 0x103   :  { %2678 = vst [vmem:[#allocation11_spill] sm:$0xff] %v1600_v60  ;;  %396 = vrot.lane.b32.xlu1 %v1602_v61, %s1390_s8  ;;  %v1283_v62 = vpop.f32.mrb[15].mxu1  ;;  %378 = vrot.lane.b32.xlu0 %v1600_v60, %s1390_s8  ;;  %v1240_v63 = vpop.f32.mrb[15].mxu0 }
 0x106   :  { %v1608_v0 = vpop.f32.mrb[16].mxu0  ;;  %v1610_v1 = vpop.f32.mrb[16].mxu1 }
 0x107   :  { %2679 = vst [vmem:[#allocation12_spill] sm:$0xff] %v1608_v0  ;;  %2680 = vst [vmem:[#allocation13_spill] sm:$0xff] %v1610_v1  ;;  %398 = vrot.lane.b32.xlu1 %v1610_v1, %s1390_s8  ;;  %380 = vrot.lane.b32.xlu0 %v1608_v0, %s1390_s8  ;;  %v1286_v2 = vpop.f32.mrb[17].mxu1  ;;  %v1243_v3 = vpop.f32.mrb[17].mxu0 }
 0x159   :  { %v1654_v17 = vpop.permute.xlu1 %382  ;;  %v1656_v18 = vpop.permute.xlu0 %364 }
 0x15a   :  { %v499_v20 = vmul.f32 %v1654_v17, %v1654_v17  ;;  %v1664_v21 = vand.u32 2147483647, %v1654_v17  ;;  %v409_v22 = vmul.f32 %v1656_v18, %v1656_v18  ;;  %v1680_v26 = vand.u32 2147483647, %v1656_v18 }
 0x15c   :  { %v1685_v28 = vadd.f32 %v499_v20, %v490_v6  ;;  %vm841_vm2 = vcmp.gt.f32.partialorder %v1664_v21, %v1624_v7  ;;  %v1689_v29 = vadd.f32 %v409_v22, %v400_v4  ;;  %vm598_vm4 = vcmp.gt.f32.partialorder %v1680_v26, %v1619_v5 }
 0x15d   :  { %v859_v35 = vsel %vm841_vm2, %v1664_v21, %v1624_v7  ;;  %v1707_v38 = vpop.permute.xlu1 %384  ;;  %v1723_v47 = vpop.permute.xlu0 %366  ;;  %v616_v58 = vsel %vm598_vm4, %v1680_v26, %v1619_v5  ;;  %v850_v2 = vsel %vm841_vm2, %v1624_v7, %v1664_v21 }
 0x15e   :  { %1315 = vrsqrt.f32 %v1685_v28  ;;  %vm868_vm3 = vcmp.eq.f32.partialorder %v859_v35, 0.0  ;;  %v500_v59 = vmul.f32 %v1707_v38, %v1707_v38  ;;  %v1747_v62 = vand.u32 2147483647, %v1707_v38 }
 0x15f   :  { %v877_v46 = vsel %vm868_vm3, 1.0, %v859_v35  ;;  %1317 = vrsqrt.f32 %v1689_v29  ;;  %vm519_vm5 = vcmp.eq.f32.partialorder %v1685_v28, inf  ;;  %vm625_vm6 = vcmp.eq.f32.partialorder %v616_v58, 0.0 }
 0x160   :  { %1319 = vrcp.f32 %v877_v46  ;;  %v410_v3 = vmul.f32 %v1723_v47, %v1723_v47  ;;  %v634_v4 = vsel %vm625_vm6, 1.0, %v616_v58  ;;  %v1759_v6 = vadd.f32 %v500_v59, %v491_v10 }
 0x161   :  { %v1749_v63 = vpop.permute.xlu1 %386  ;;  %vm842_vm7 = vcmp.gt.f32.partialorder %v1747_v62, %v1634_v11  ;;  %v1764_v20 = vand.u32 2147483647, %v1723_v47  ;;  %1321 = vrcp.f32 %v634_v4  ;;  %vm521_vm8 = vcmp.eq.f32.partialorder %v1685_v28, 0.0  ;;  %v1781_v59 = vpop.permute.xlu0 %368 }
 0x162   :  { %v860_v22 = vsel %vm842_vm7, %v1747_v62, %v1634_v11  ;;  %v1771_v35 = vadd.f32 %v410_v3, %v401_v8  ;;  %v501_v46 = vmul.f32 %v1749_v63, %v1749_v63  ;;  %v522_v10 = vand.u32 2147483648, %v1685_v28  ;;  %2691 = vst [vmem:[#allocation24_spill] sm:$0xff] %v1781_v59 }
 0x163   :  { %1323 = vrsqrt.f32 %v1759_v6  ;;  %vm869_vm9 = vcmp.eq.f32.partialorder %v860_v22, 0.0  ;;  %vm429_vm10 = vcmp.eq.f32.partialorder %v1689_v29, inf  ;;  %vm431_vm11 = vcmp.eq.f32.partialorder %v1689_v29, 0.0 }
 0x164   :  { %v878_v58 = vsel %vm869_vm9, 1.0, %v860_v22  ;;  %1325 = vrsqrt.f32 %v1771_v35  ;;  %v432_v8 = vand.u32 2147483648, %v1689_v29  ;;  %v607_v3 = vsel %vm598_vm4, %v1619_v5, %v1680_v26 }
 0x165   :  { %1327 = vrcp.f32 %v878_v58  ;;  %vm599_vm12 = vcmp.gt.f32.partialorder %v1764_v20, %v1629_v9  ;;  %v851_v22 = vsel %vm842_vm7, %v1634_v11, %v1747_v62  ;;  %v1802_v57 = vadd.f32 %v501_v46, %v1645_v14 }
 0x166   :  { %v617_v56 = vsel %vm599_vm12, %v1764_v20, %v1629_v9  ;;  %v1805_v58 = vand.u32 2147483647, %v1749_v63  ;;  %vm526_vm13 = vcmp.eq.f32.partialorder %v1759_v6, inf  ;;  %v411_v60 = vmul.f32 %v1781_v59, %v1781_v59 }
 0x167   :  { %vm626_vm14 = vcmp.eq.f32.partialorder %v617_v56, 0.0  ;;  %1329 = vrsqrt.f32 %v1802_v57  ;;  %vm528_vm0 = vcmp.eq.f32.partialorder %v1759_v6, 0.0  ;;  %vm436_vm1 = vcmp.eq.f32.partialorder %v1771_v35, inf }
 0x168   :  { %v1316_v4 = vpop.eup %1315  ;;  %v635_v51 = vsel %vm626_vm14, 1.0, %v617_v56  ;;  %vm843_vm15 = vcmp.gt.f32.partialorder %v1805_v58, %v1648_v15  ;;  %vm533_vm6 = vcmp.eq.f32.partialorder %v1802_v57, inf  ;;  %vm535_vm9 = vcmp.eq.f32.partialorder %v1802_v57, 0.0 }
 0x169   :  { %v1318_v1 = vpop.eup %1317  ;;  %v518_v0 = vmul.f32 %v1316_v4, %v1685_v28  ;;  %1331 = vrcp.f32 %v635_v51  ;;  %v439_v51 = vand.u32 2147483648, %v1771_v35  ;;  %vm1012_vm14 = vcmp.lt.f32.partialorder %v1546_v33, 0.0 }
 0x16a   :  { %v1320_v52 = vpop.eup %1319  ;;  %v428_v53 = vmul.f32 %v1318_v1, %v1689_v29  ;;  %v529_v1 = vand.u32 2147483648, %v1759_v6 }
 0x16b   :  { %v1815_v14 = vmul.f32 %v1320_v52, %v850_v2  ;;  %v520_v46 = vsel %vm519_vm5, %v1685_v28, %v518_v0  ;;  %v861_v52 = vsel %vm843_vm15, %v1805_v58, %v1648_v15  ;;  %vm438_vm5 = vcmp.eq.f32.partialorder %v1771_v35, 0.0 }
 0x16c   :  { %v1823_v4 = vsel %vm521_vm8, %v522_v10, %v520_v46  ;;  %v430_v56 = vsel %vm429_vm10, %v1689_v29, %v428_v53  ;;  %vm870_vm3 = vcmp.eq.f32.partialorder %v861_v52, 0.0  ;;  %v1322_v53 = vpop.eup %1321  ;;  %v1847_v10 = vadd.f32 %v411_v60, %v1638_v12 }
 0x16d   :  { %v1836_v0 = vmul.f32 %v1815_v14, %v1815_v14  ;;  %v1840_v28 = vsel %vm431_vm11, %v432_v8, %v430_v56  ;;  %v879_v2 = vsel %vm870_vm3, 1.0, %v861_v52  ;;  %v1324_v46 = vpop.eup %1323  ;;  %v1850_v50 = vmul.f32 %v1322_v53, %v607_v3 }
 0x16e   :  { %1333 = vrcp.f32 %v879_v2  ;;  %v1853_v29 = vand.u32 2147483647, %v1781_v59  ;;  %v1326_v8 = vpop.eup %1325  ;;  %v525_v56 = vmul.f32 %v1324_v46, %v1759_v6  ;;  %v608_v60 = vsel %vm599_vm12, %v1629_v9, %v1764_v20 }
 0x16f   :  { %v913_v48 = vmul.f32 0.0208351, %v1836_v0  ;;  %1335 = vrsqrt.f32 %v1847_v10  ;;  %v1328_v12 = vpop.eup %1327  ;;  %v661_v52 = vmul.f32 %v1850_v50, %v1850_v50  ;;  %v435_v53 = vmul.f32 %v1326_v8, %v1771_v35 }
 0x170   :  { %v852_v2 = vsel %vm843_vm15, %v1648_v15, %v1805_v58  ;;  %v1871_v46 = vmul.f32 %v1328_v12, %v851_v22  ;;  %v527_v49 = vsel %vm526_vm13, %v1759_v6, %v525_v56  ;;  %vm600_vm8 = vcmp.gt.f32.partialorder %v1853_v29, %v1641_v13 }
 0x171   :  { %v922_v3 = vadd.f32 -0.085133, %v913_v48  ;;  %v670_v8 = vmul.f32 0.0208351, %v661_v52  ;;  %v1882_v55 = vsel %vm528_vm0, %v529_v1, %v527_v49  ;;  %v437_v22 = vsel %vm436_vm1, %v1771_v35, %v435_v53  ;;  %v1330_v12 = vpop.eup %1329 }
 0x172   :  { %v1889_v56 = vmul.f32 %v1871_v46, %v1871_v46  ;;  %v1893_v54 = vsel %vm438_vm5, %v439_v51, %v437_v22  ;;  %v618_v49 = vsel %vm600_vm8, %v1853_v29, %v1641_v13  ;;  %v532_v44 = vmul.f32 %v1330_v12, %v1802_v57 }
 0x173   :  { %v931_v48 = vmul.f32 %v922_v3, %v1836_v0  ;;  %v1332_v6 = vpop.eup %1331  ;;  %v679_v3 = vadd.f32 -0.085133, %v670_v8  ;;  %v536_v22 = vand.u32 2147483648, %v1802_v57  ;;  %vm627_vm10 = vcmp.eq.f32.partialorder %v618_v49, 0.0 }
 0x174   :  { %v914_v35 = vmul.f32 0.0208351, %v1889_v56  ;;  %v1905_v51 = vmul.f32 %v1332_v6, %v608_v60  ;;  %vm443_vm11 = vcmp.eq.f32.partialorder %v1847_v10, inf  ;;  %vm445_vm13 = vcmp.eq.f32.partialorder %v1847_v10, 0.0 }
 0x175   :  { %v940_v1 = vadd.f32 0.180141, %v931_v48  ;;  %v688_v34 = vmul.f32 %v679_v3, %v661_v52  ;;  %v1911_v48 = vpop.permute.xlu1 %388  ;;  %v446_v60 = vand.u32 2147483648, %v1847_v10  ;;  %v636_v6 = vsel %vm627_vm10, 1.0, %v618_v49 }
 0x176   :  { %v923_v8 = vadd.f32 -0.085133, %v914_v35  ;;  %v1915_v12 = vmul.f32 %v1905_v51, %v1905_v51  ;;  %1337 = vrcp.f32 %v636_v6  ;;  %v1926_v59 = vand.u32 2147483647, %v1911_v48 }
 0x177   :  { %v949_v39 = vmul.f32 %v940_v1, %v1836_v0  ;;  %v697_v42 = vadd.f32 0.180141, %v688_v34  ;;  %v534_v1 = vsel %vm533_vm6, %v1802_v57, %v532_v44  ;;  %vm769_vm1 = vcmp.lt.f32.partialorder %v1544_v32, 0.0 }
 0x178   :  { %v1334_v53 = vpop.eup %1333  ;;  %v932_v27 = vmul.f32 %v923_v8, %v1889_v56  ;;  %v671_v35 = vmul.f32 0.0208351, %v1915_v12  ;;  %vm844_vm0 = vcmp.gt.f32.partialorder %v1926_v59, %v1673_v24  ;;  %vm1013_vm5 = vcmp.lt.f32.partialorder %v1554_v37, 0.0 }
 0x179   :  { %v958_v43 = vadd.f32 -0.3302995, %v949_v39  ;;  %v1336_v3 = vpop.eup %1335  ;;  %v1923_v45 = vmul.f32 %v1334_v53, %v852_v2  ;;  %v706_v25 = vmul.f32 %v697_v42, %v661_v52  ;;  %v502_v39 = vmul.f32 %v1911_v48, %v1911_v48 }
 0x17a   :  { %v442_v34 = vmul.f32 %v1336_v3, %v1847_v10  ;;  %v941_v44 = vadd.f32 0.180141, %v932_v27  ;;  %v680_v6 = vadd.f32 -0.085133, %v671_v35  ;;  %v1938_v2 = vsel %vm535_vm9, %v536_v22, %v534_v1  ;;  %v1985_v1 = vpop.permute.xlu0 %370 }
 0x17b   :  { %v967_v49 = vmul.f32 %v958_v43, %v1836_v0  ;;  %v1934_v8 = vmul.f32 %v1923_v45, %v1923_v45  ;;  %v715_v43 = vadd.f32 -0.3302995, %v706_v25  ;;  %v1957_v35 = vadd.f32 %v502_v39, %v1670_v23 }
 0x17c   :  { %v444_v42 = vsel %vm443_vm11, %v1847_v10, %v442_v34  ;;  %v950_v27 = vmul.f32 %v941_v44, %v1889_v56  ;;  %v689_v0 = vmul.f32 %v680_v6, %v1915_v12  ;;  %v862_v10 = vsel %vm844_vm0, %v1926_v59, %v1673_v24 }
 0x17d   :  { %v976_v53 = vadd.f32 0.999866, %v967_v49  ;;  %v915_v3 = vmul.f32 0.0208351, %v1934_v8  ;;  %v1951_v57 = vsel %vm445_vm13, %v446_v60, %v444_v42  ;;  %v724_v25 = vmul.f32 %v715_v43, %v661_v52 }
 0x17e   :  { %v959_v49 = vadd.f32 -0.3302995, %v950_v27  ;;  %v698_v34 = vadd.f32 0.180141, %v689_v0  ;;  %v609_v23 = vsel %vm600_vm8, %v1641_v13, %v1853_v29  ;;  %vm871_vm3 = vcmp.eq.f32.partialorder %v862_v10, 0.0 }
 0x17f   :  { %v985_v22 = vmul.f32 %v976_v53, %v1815_v14  ;;  %v924_v44 = vadd.f32 -0.085133, %v915_v3  ;;  %v1966_v14 = vand.u32 2147483647, %v1602_v61  ;;  %v733_v60 = vadd.f32 0.999866, %v724_v25 }
 0x180   :  { %v968_v39 = vmul.f32 %v959_v49, %v1889_v56  ;;  %v707_v6 = vmul.f32 %v698_v34, %v1915_v12  ;;  %v1338_v43 = vpop.eup %1337  ;;  %1339 = vrsqrt.f32 %v1957_v35  ;;  %v880_v0 = vsel %vm871_vm3, 1.0, %v862_v10 }
 0x181   :  { %v994_v52 = vsub.f32 1.5707964, %v985_v22  ;;  %v933_v53 = vmul.f32 %v924_v44, %v1934_v8  ;;  %v742_v27 = vmul.f32 %v733_v60, %v1850_v50  ;;  %v1982_v49 = vmul.f32 %v1338_v43, %v609_v23 }
 0x182   :  { %v977_v25 = vadd.f32 0.999866, %v968_v39  ;;  %v716_v56 = vadd.f32 -0.3302995, %v707_v6  ;;  %vm1039_vm6 = vcmp.lt.f32.partialorder %v1654_v17, 0.0  ;;  %1341 = vrcp.f32 %v880_v0 }
 0x183   :  { %v1003_v42 = vsel %vm841_vm2, %v994_v52, %v985_v22  ;;  %v751_v34 = vsub.f32 1.5707964, %v742_v27  ;;  %v942_v44 = vadd.f32 0.180141, %v933_v53  ;;  %v1993_v22 = vmul.f32 %v1982_v49, %v1982_v49 }
 0x184   :  { %v1021_v3 = vsub.f32 3.1415927, %v1003_v42  ;;  %v986_v21 = vmul.f32 %v977_v25, %v1871_v46  ;;  %v725_v50 = vmul.f32 %v716_v56, %v1915_v12  ;;  %vm796_vm2 = vcmp.lt.f32.partialorder %v1656_v18, 0.0 }
 0x185   :  { %v760_v52 = vsel %vm598_vm4, %v751_v34, %v742_v27  ;;  %v951_v60 = vmul.f32 %v942_v44, %v1934_v8  ;;  %vm770_vm9 = vcmp.lt.f32.partialorder %v1552_v36, 0.0  ;;  %v412_v12 = vmul.f32 %v1985_v1, %v1985_v1 }
 0x186   :  { %v1030_v7 = vsel %vm1012_vm14, %v1021_v3, %v1003_v42  ;;  %v778_v33 = vsub.f32 3.1415927, %v760_v52  ;;  %v995_v23 = vsub.f32 1.5707964, %v986_v21  ;;  %v734_v46 = vadd.f32 0.999866, %v725_v50 }
 0x187   :  { %v1048_v10 = vsub.f32 0.0, %v1030_v7  ;;  %vm1040_vm10 = vcmp.lt.f32.partialorder %v1707_v38, 0.0  ;;  %v960_v6 = vadd.f32 -0.3302995, %v951_v60  ;;  %v672_v5 = vmul.f32 0.0208351, %v1993_v22 }
 0x188   :  { %v787_v26 = vsel %vm769_vm1, %v778_v33, %v760_v52  ;;  %v2692_v53 = vsub.f32 %v1840_v28, %v1823_v4  ;;  %v1004_v42 = vsel %vm842_vm7, %v995_v23, %v986_v21  ;;  %v743_v27 = vmul.f32 %v734_v46, %v1905_v51 }
 0x189   :  { %v1057_v39 = vsel %vm1039_vm6, %v1048_v10, %v1030_v7  ;;  %v805_v17 = vsub.f32 0.0, %v787_v26  ;;  %v1022_v0 = vsub.f32 3.1415927, %v1004_v42  ;;  %vm797_vm4 = vcmp.lt.f32.partialorder %v1723_v47, 0.0 }
 0x18a   :  { %v1075_v43 = vand.u32 2147483647, %v2692_v53  ;;  %v969_v3 = vmul.f32 %v960_v6, %v1934_v8  ;;  %v681_v25 = vadd.f32 -0.085133, %v672_v5  ;;  %v752_v56 = vsub.f32 1.5707964, %v743_v27  ;;  %v1340_v62 = vpop.eup %1339  ;;  %v2065_v5 = vpop.permute.xlu1 %390 }
 0x18b   :  { %v2693_v32 = vsub.f32 %v1893_v54, %v1882_v55  ;;  %v2022_v4 = vadd.f32 %v412_v12, %v1652_v16  ;;  %v2025_v11 = vand.u32 2147483647, %v1985_v1  ;;  %v814_v28 = vsel %vm796_vm2, %v805_v17, %v787_v26 }
 0x18c   :  { %v1031_v51 = vsel %vm1013_vm5, %v1022_v0, %v1004_v42  ;;  %v978_v8 = vadd.f32 0.999866, %v969_v3  ;;  %v690_v44 = vmul.f32 %v681_v25, %v1993_v22  ;;  %v1084_v7 = vsub.f32 %v814_v28, %v1057_v39  ;;  %v1342_v54 = vpop.eup %1341 }
 0x18d   :  { %v1076_v34 = vand.u32 2147483647, %v2693_v32  ;;  %v1049_v21 = vsub.f32 0.0, %v1031_v51  ;;  %v761_v16 = vsel %vm599_vm12, %v752_v56, %v743_v27  ;;  %1343 = vrsqrt.f32 %v2022_v4  ;;  %v2080_v56 = vpop.permute.xlu0 %372 }
 0x18e   :  { %v779_v55 = vsub.f32 3.1415927, %v761_v16  ;;  %v987_v50 = vmul.f32 %v978_v8, %v1923_v45  ;;  %v699_v18 = vadd.f32 0.180141, %v690_v44  ;;  %v853_v37 = vsel %vm844_vm0, %v1673_v24, %v1926_v59  ;;  %v2124_v13 = vpop.permute.xlu1 %392 }
 0x18f   :  { %vm1014_vm7 = vcmp.lt.f32.partialorder %v1562_v41, 0.0  ;;  %v1093_v10 = vand.u32 2147483647, %v1084_v7  ;;  %v2043_v52 = vmul.f32 %v1342_v54, %v853_v37  ;;  %v539_v9 = vmul.f32 %v1340_v62, %v1957_v35 }
 0x190   :  { %vm540_vm12 = vcmp.eq.f32.partialorder %v1957_v35, inf  ;;  %v1058_v20 = vsel %vm1040_vm10, %v1049_v21, %v1031_v51  ;;  %v788_v45 = vsel %vm770_vm9, %v779_v55, %v761_v16  ;;  %v996_v60 = vsub.f32 1.5707964, %v987_v50 }
 0x191   :  { %v708_v33 = vmul.f32 %v699_v18, %v1993_v22  ;;  %v1102_v23 = vadd.f32 %v1093_v10, %v1075_v43  ;;  %v806_v46 = vsub.f32 0.0, %v788_v45  ;;  %v907_v12 = vmul.f32 %v2043_v52, %v2043_v52 }
 0x192   :  { %vm601_vm11 = vcmp.gt.f32.partialorder %v2025_v11, %v1659_v19  ;;  %v1005_v39 = vsel %vm843_vm15, %v996_v60, %v987_v50  ;;  %v543_v6 = vand.u32 2147483648, %v1957_v35  ;;  %v541_v15 = vsel %vm540_vm12, %v1957_v35, %v539_v9  ;;  %v2695_v60 = vld [vmem:[#allocation24_spill] sm:$0xff] }
 0x193   :  { %v717_v38 = vadd.f32 -0.3302995, %v708_v33  ;;  %v619_v36 = vsel %vm601_vm11, %v2025_v11, %v1659_v19  ;;  %v815_v26 = vsel %vm797_vm4, %v806_v46, %v788_v45  ;;  %v916_v53 = vmul.f32 0.0208351, %v907_v12 }
 0x194   :  { %vm628_vm15 = vcmp.eq.f32.partialorder %v619_v36, 0.0  ;;  %v1085_v58 = vsub.f32 %v815_v26, %v1058_v20  ;;  %v1023_v43 = vsub.f32 3.1415927, %v1005_v39  ;;  %vm542_vm13 = vcmp.eq.f32.partialorder %v1957_v35, 0.0  ;;  %v2694_v20 = vld [vmem:[#allocation14_spill] sm:$0xff]  ;;  %v2697_v26 = vld [vmem:[#allocation4_spill] sm:$0xff] }
 0x195   :  { %v726_v42 = vmul.f32 %v717_v38, %v1993_v22  ;;  %v637_v27 = vsel %vm628_vm15, 1.0, %v619_v36  ;;  %v925_v17 = vadd.f32 -0.085133, %v916_v53  ;;  %v503_v0 = vmul.f32 %v2065_v5, %v2065_v5 }
 0x196   :  { %1345 = vrcp.f32 %v637_v27  ;;  %vm771_vm14 = vcmp.lt.f32.partialorder %v1560_v40, 0.0  ;;  %v1094_v47 = vand.u32 2147483647, %v1085_v58  ;;  %v2077_v25 = vsel %vm542_vm13, %v543_v6, %v541_v15 }
 0x197   :  { %v735_v3 = vadd.f32 0.999866, %v726_v42  ;;  %vm450_vm1 = vcmp.eq.f32.partialorder %v2022_v4, inf  ;;  %v1344_v32 = vpop.eup %1343  ;;  %v934_v22 = vmul.f32 %v925_v17, %v907_v12  ;;  %v453_v62 = vand.u32 2147483648, %v2022_v4 }
 0x198   :  { %v2084_v35 = vadd.f32 %v503_v0, %v1693_v30  ;;  %v2087_v28 = vand.u32 2147483647, %v2065_v5  ;;  %v1103_v51 = vadd.f32 %v1094_v47, %v1076_v34  ;;  %v1032_v8 = vsel %vm1014_vm7, %v1023_v43, %v1005_v39  ;;  %v2699_v47 = vld [vmem:[#allocation18_spill] sm:$0xff] }
 0x199   :  { %v744_v44 = vmul.f32 %v735_v3, %v1982_v49  ;;  %v449_v7 = vmul.f32 %v1344_v32, %v2022_v4  ;;  %v943_v21 = vadd.f32 0.180141, %v934_v22  ;;  %v413_v30 = vmul.f32 %v2080_v56, %v2080_v56 }
 0x19a   :  { %1347 = vrsqrt.f32 %v2084_v35  ;;  %vm845_vm3 = vcmp.gt.f32.partialorder %v2087_v28, %v1696_v31  ;;  %v2098_v16 = vadd.f32 %v1103_v51, %v1102_v23  ;;  %vm452_vm5 = vcmp.eq.f32.partialorder %v2022_v4, 0.0 }
 0x19b   :  { %v753_v54 = vsub.f32 1.5707964, %v744_v44  ;;  %v451_v41 = vsel %vm450_vm1, %v2022_v4, %v449_v7  ;;  %vm1041_vm6 = vcmp.lt.f32.partialorder %v1749_v63, 0.0  ;;  %v952_v49 = vmul.f32 %v943_v21, %v907_v12 }
 0x19c   :  { %v454_v34 = vsel %vm452_vm5, %v453_v62, %v451_v41  ;;  %v863_v55 = vsel %vm845_vm3, %v2087_v28, %v1696_v31  ;;  %v1050_v50 = vsub.f32 0.0, %v1032_v8  ;;  %v2115_v45 = vadd.f32 %v413_v30, %v2694_v20  ;;  %v2700_v62 = vld [vmem:[#allocation19_spill] sm:$0xff] }
 0x19d   :  { %v762_v18 = vsel %vm600_vm8, %v753_v54, %v744_v44  ;;  %v1069_v37 = vsub.f32 %v454_v34, %v2077_v25  ;;  %vm872_vm2 = vcmp.eq.f32.partialorder %v863_v55, 0.0  ;;  %v961_v4 = vadd.f32 -0.3302995, %v952_v49 }
 0x19e   :  { %v780_v10 = vsub.f32 3.1415927, %v762_v18  ;;  %v881_v9 = vsel %vm872_vm2, 1.0, %v863_v55  ;;  %vm798_vm9 = vcmp.lt.f32.partialorder %v2695_v60, 0.0  ;;  %v2696_v33 = vsub.f32 %v1951_v57, %v1938_v2 }
 0x19f   :  { %1349 = vrcp.f32 %v881_v9  ;;  %v2122_v46 = vand.u32 2147483647, %v2080_v56  ;;  %v970_v38 = vmul.f32 %v961_v4, %v907_v12  ;;  %v610_v6 = vsel %vm601_vm11, %v1659_v19, %v2025_v11  ;;  %v2698_v12 = vld [vmem:[#allocation15_spill] sm:$0xff]  ;;  %v2706_v11 = vld [vmem:[#allocation6_spill] sm:$0xff] }
 0x1a0   :  { %v1077_v23 = vand.u32 2147483647, %v2696_v33  ;;  %v1346_v29 = vpop.eup %1345  ;;  %v789_v39 = vsel %vm771_vm14, %v780_v10, %v762_v18  ;;  %1351 = vrsqrt.f32 %v2115_v45  ;;  %v1059_v2 = vsel %vm1041_vm6, %v1050_v50, %v1032_v8  ;;  %v2189_v18 = vpop.permute.xlu0 %374 }
 0x1a1   :  { %v807_v57 = vsub.f32 0.0, %v789_v39  ;;  %v2136_v36 = vmul.f32 %v1346_v29, %v610_v6  ;;  %vm547_vm8 = vcmp.eq.f32.partialorder %v2084_v35, inf  ;;  %vm1015_vm10 = vcmp.lt.f32.partialorder %v2697_v26, 0.0  ;;  %v2701_v26 = vld [vmem:[#allocation16_spill] sm:$0xff] }
 0x1a2   :  { %v979_v40 = vadd.f32 0.999866, %v970_v38  ;;  %vm602_vm4 = vcmp.gt.f32.partialorder %v2122_v46, %v2698_v12  ;;  %v504_v53 = vmul.f32 %v2124_v13, %v2124_v13  ;;  %v2145_v15 = vand.u32 2147483647, %v2124_v13 }
 0x1a3   :  { %v816_v63 = vsel %vm798_vm9, %v807_v57, %v789_v39  ;;  %v2151_v58 = vmul.f32 %v2136_v36, %v2136_v36  ;;  %v854_v43 = vsel %vm845_vm3, %v1696_v31, %v2087_v28  ;;  %v620_v42 = vsel %vm602_vm4, %v2122_v46, %v2698_v12  ;;  %v2709_v28 = vld [vmem:[#allocation21_spill] sm:$0xff] }
 0x1a4   :  { %v1348_v27 = vpop.eup %1347  ;;  %v1086_v17 = vsub.f32 %v816_v63, %v1059_v2  ;;  %v988_v0 = vmul.f32 %v979_v40, %v2043_v52  ;;  %vm629_vm7 = vcmp.eq.f32.partialorder %v620_v42, 0.0  ;;  %v2165_v3 = vadd.f32 %v504_v53, %v2699_v47  ;;  %v2702_v63 = vld [vmem:[#allocation17_spill] sm:$0xff] }
 0x1a5   :  { %v673_v25 = vmul.f32 0.0208351, %v2151_v58  ;;  %v546_v32 = vmul.f32 %v1348_v27, %v2084_v35  ;;  %v638_v22 = vsel %vm629_vm7, 1.0, %v620_v42  ;;  %vm846_vm12 = vcmp.gt.f32.partialorder %v2145_v15, %v2700_v62 }
 0x1a6   :  { %v1095_v51 = vand.u32 2147483647, %v1086_v17  ;;  %v997_v8 = vsub.f32 1.5707964, %v988_v0  ;;  %vm549_vm15 = vcmp.eq.f32.partialorder %v2084_v35, 0.0  ;;  %1353 = vrcp.f32 %v638_v22 }
 0x1a7   :  { %v682_v44 = vadd.f32 -0.085133, %v673_v25  ;;  %v550_v52 = vand.u32 2147483648, %v2084_v35  ;;  %1355 = vrsqrt.f32 %v2165_v3  ;;  %v864_v7 = vsel %vm846_vm12, %v2145_v15, %v2700_v62 }
 0x1a8   :  { %v1104_v21 = vadd.f32 %v1095_v51, %v1077_v23  ;;  %v1006_v30 = vsel %vm844_vm0, %v997_v8, %v988_v0  ;;  %v2182_v54 = vand.u32 2147483647, %v1069_v37  ;;  %vm873_vm13 = vcmp.eq.f32.partialorder %v864_v7, 0.0  ;;  %v2212_v23 = vpop.permute.xlu1 %394 }
 0x1a9   :  { %v1350_v41 = vpop.eup %1349  ;;  %v1024_v49 = vsub.f32 3.1415927, %v1006_v30  ;;  %vm1042_vm14 = vcmp.lt.f32.partialorder %v1911_v48, 0.0  ;;  %v691_v34 = vmul.f32 %v682_v44, %v2151_v58  ;;  %v548_v55 = vsel %vm547_vm8, %v2084_v35, %v546_v32  ;;  %v2703_v44 = vld [vmem:[#allocation3_spill] sm:$0xff]  ;;  %v2704_v48 = vld [vmem:[#allocation22_spill] sm:$0xff] }
 0x1aa   :  { %v882_v50 = vsel %vm873_vm13, 1.0, %v864_v7  ;;  %v1352_v10 = vpop.eup %1351  ;;  %v2192_v24 = vadd.f32 %v2098_v16, %v1104_v21  ;;  %v2194_v59 = vmul.f32 %v1350_v41, %v854_v43  ;;  %vm457_vm0 = vcmp.eq.f32.partialorder %v2115_v45, inf }
 0x1ab   :  { %1357 = vrcp.f32 %v882_v50  ;;  %v1033_v37 = vsel %vm1015_vm10, %v1024_v49, %v1006_v30  ;;  %v700_v4 = vadd.f32 0.180141, %v691_v34  ;;  %v456_v9 = vmul.f32 %v1352_v10, %v2115_v45 }
 0x1ac   :  { %vm459_vm1 = vcmp.eq.f32.partialorder %v2115_v45, 0.0  ;;  %v2203_v20 = vmul.f32 %v2194_v59, %v2194_v59  ;;  %v2207_v16 = vsel %vm549_vm15, %v550_v52, %v548_v55  ;;  %v460_v60 = vand.u32 2147483648, %v2115_v45 }
 0x1ad   :  { %v414_v33 = vmul.f32 %v2189_v18, %v2189_v18  ;;  %v709_v29 = vmul.f32 %v700_v4, %v2151_v58  ;;  %v458_v39 = vsel %vm457_vm0, %v2115_v45, %v456_v9  ;;  %v611_v38 = vsel %vm602_vm4, %v2698_v12, %v2122_v46  ;;  %v2705_v9 = vld [vmem:[#allocation23_spill] sm:$0xff] }
 0x1ae   :  { %v2222_v35 = vand.u32 2147483647, %v2189_v18  ;;  %v1051_v6 = vsub.f32 0.0, %v1033_v37  ;;  %v917_v2 = vmul.f32 0.0208351, %v2203_v20  ;;  %v2225_v57 = vsel %vm459_vm1, %v460_v60, %v458_v39 }
 0x1af   :  { %v2228_v40 = vadd.f32 %v414_v33, %v2701_v26  ;;  %v718_v53 = vadd.f32 -0.3302995, %v709_v29  ;;  %v1070_v45 = vsub.f32 %v2225_v57, %v2207_v16  ;;  %v505_v43 = vmul.f32 %v2212_v23, %v2212_v23 }
 0x1b0   :  { %vm603_vm5 = vcmp.gt.f32.partialorder %v2222_v35, %v2702_v63  ;;  %v1354_v42 = vpop.eup %1353  ;;  %v926_v27 = vadd.f32 -0.085133, %v917_v2  ;;  %v855_v17 = vsel %vm846_vm12, %v2700_v62, %v2145_v15  ;;  %vm554_vm6 = vcmp.eq.f32.partialorder %v2165_v3, inf }
 0x1b1   :  { %1359 = vrsqrt.f32 %v2228_v40  ;;  %v1356_v0 = vpop.eup %1355  ;;  %v727_v47 = vmul.f32 %v718_v53, %v2151_v58  ;;  %v2244_v25 = vmul.f32 %v1354_v42, %v611_v38  ;;  %vm556_vm2 = vcmp.eq.f32.partialorder %v2165_v3, 0.0 }
 0x1b2   :  { %v557_v32 = vand.u32 2147483648, %v2165_v3  ;;  %v2250_v22 = vsel %vm1042_vm14, %v1051_v6, %v1033_v37  ;;  %v935_v51 = vmul.f32 %v926_v27, %v2203_v20  ;;  %v553_v8 = vmul.f32 %v1356_v0, %v2165_v3 }
 0x1b3   :  { %v621_v58 = vsel %vm603_vm5, %v2222_v35, %v2702_v63  ;;  %vm772_vm9 = vcmp.lt.f32.partialorder %v2703_v44, 0.0  ;;  %v736_v52 = vadd.f32 0.999866, %v727_v47  ;;  %v665_v7 = vmul.f32 %v2244_v25, %v2244_v25 }
 0x1b4   :  { %vm630_vm8 = vcmp.eq.f32.partialorder %v621_v58, 0.0  ;;  %v2263_v21 = vadd.f32 %v505_v43, %v2704_v48  ;;  %v944_v41 = vadd.f32 0.180141, %v935_v51  ;;  %vm464_vm10 = vcmp.eq.f32.partialorder %v2228_v40, inf  ;;  %v2300_v43 = vpop.permute.xlu0 %376 }
 0x1b5   :  { %v1358_v30 = vpop.eup %1357  ;;  %v639_v49 = vsel %vm630_vm8, 1.0, %v621_v58  ;;  %v2267_v34 = vand.u32 2147483647, %v2212_v23  ;;  %v745_v55 = vmul.f32 %v736_v52, %v2136_v36  ;;  %v674_v50 = vmul.f32 0.0208351, %v665_v7 }
 0x1b6   :  { %v2270_v10 = vmul.f32 %v1358_v30, %v855_v17  ;;  %vm466_vm7 = vcmp.eq.f32.partialorder %v2228_v40, 0.0  ;;  %vm799_vm15 = vcmp.lt.f32.partialorder %v1985_v1, 0.0  ;;  %v953_v37 = vmul.f32 %v944_v41, %v2203_v20 }
 0x1b7   :  { %v555_v4 = vsel %vm554_vm6, %v2165_v3, %v553_v8  ;;  %1361 = vrcp.f32 %v639_v49  ;;  %vm847_vm13 = vcmp.gt.f32.partialorder %v2267_v34, %v2705_v9  ;;  %v754_v60 = vsub.f32 1.5707964, %v745_v55 }
 0x1b8   :  { %v683_v33 = vadd.f32 -0.085133, %v674_v50  ;;  %v2282_v36 = vmul.f32 %v2270_v10, %v2270_v10  ;;  %1363 = vrsqrt.f32 %v2263_v21  ;;  %v962_v29 = vadd.f32 -0.3302995, %v953_v37 }
 0x1b9   :  { %v467_v39 = vand.u32 2147483648, %v2228_v40  ;;  %v612_v38 = vsel %vm603_vm5, %v2702_v63, %v2222_v35  ;;  %v865_v6 = vsel %vm847_vm13, %v2267_v34, %v2705_v9  ;;  %v763_v2 = vsel %vm601_vm11, %v754_v60, %v745_v55  ;;  %v2707_v55 = vld [vmem:[#allocation20_spill] sm:$0xff] }
 0x1ba   :  { %v692_v26 = vmul.f32 %v683_v33, %v665_v7  ;;  %v918_v53 = vmul.f32 0.0208351, %v2282_v36  ;;  %vm874_vm14 = vcmp.eq.f32.partialorder %v865_v6, 0.0  ;;  %v781_v27 = vsub.f32 3.1415927, %v763_v2 }
 0x1bb   :  { %v1360_v42 = vpop.eup %1359  ;;  %v971_v17 = vmul.f32 %v962_v29, %v2203_v20  ;;  %v2305_v0 = vsel %vm556_vm2, %v557_v32, %v555_v4  ;;  %v883_v47 = vsel %vm874_vm14, 1.0, %v865_v6  ;;  %vm1016_vm11 = vcmp.lt.f32.partialorder %v2706_v11, 0.0 }
 0x1bc   :  { %v701_v51 = vadd.f32 0.180141, %v692_v26  ;;  %v927_v8 = vadd.f32 -0.085133, %v918_v53  ;;  %v463_v19 = vmul.f32 %v1360_v42, %v2228_v40  ;;  %1365 = vrcp.f32 %v883_v47 }
 0x1bd   :  { %v790_v58 = vsel %vm772_vm9, %v781_v27, %v763_v2  ;;  %v980_v52 = vadd.f32 0.999866, %v971_v17  ;;  %v856_v3 = vsel %vm847_vm13, %v2705_v9, %v2267_v34  ;;  %v415_v20 = vmul.f32 %v2300_v43, %v2300_v43  ;;  %v2708_v17 = vld [vmem:[#allocation5_spill] sm:$0xff] }
 0x1be   :  { %v808_v32 = vsub.f32 0.0, %v790_v58  ;;  %v710_v48 = vmul.f32 %v701_v51, %v665_v7  ;;  %v936_v30 = vmul.f32 %v927_v8, %v2282_v36  ;;  %v465_v41 = vsel %vm464_vm10, %v2228_v40, %v463_v19 }
 0x1bf   :  { %v989_v44 = vmul.f32 %v980_v52, %v2194_v59  ;;  %v2325_v49 = vsel %vm466_vm7, %v467_v39, %v465_v41  ;;  %vm561_vm0 = vcmp.eq.f32.partialorder %v2263_v21, inf  ;;  %v2329_v50 = vadd.f32 %v415_v20, %v2707_v55 }
 0x1c0   :  { %v817_v37 = vsel %vm799_vm15, %v808_v32, %v790_v58  ;;  %v719_v4 = vadd.f32 -0.3302995, %v710_v48  ;;  %v945_v60 = vadd.f32 0.180141, %v936_v30  ;;  %v1071_v33 = vsub.f32 %v2325_v49, %v2305_v0 }
 0x1c1   :  { %v1362_v29 = vpop.eup %1361  ;;  %v1087_v59 = vsub.f32 %v817_v37, %v2250_v22  ;;  %v998_v6 = vsub.f32 1.5707964, %v989_v44  ;;  %1367 = vrsqrt.f32 %v2329_v50  ;;  %v2338_v40 = vand.u32 2147483647, %v2300_v43  ;;  %v2373_v37 = vpop.permute.xlu1 %396 }
 0x1c2   :  { %v1364_v39 = vpop.eup %1363  ;;  %v728_v2 = vmul.f32 %v719_v4, %v665_v7  ;;  %v954_v26 = vmul.f32 %v945_v60, %v2282_v36  ;;  %v2341_v1 = vmul.f32 %v1362_v29, %v612_v38  ;;  %vm563_vm1 = vcmp.eq.f32.partialorder %v2263_v21, 0.0 }
 0x1c3   :  { %v1096_v53 = vand.u32 2147483647, %v1087_v59  ;;  %v1007_v42 = vsel %vm845_vm3, %v998_v6, %v989_v44  ;;  %v560_v22 = vmul.f32 %v1364_v39, %v2263_v21  ;;  %v564_v27 = vand.u32 2147483648, %v2263_v21 }
 0x1c4   :  { %vm773_vm6 = vcmp.lt.f32.partialorder %v2708_v17, 0.0  ;;  %v1025_v47 = vsub.f32 3.1415927, %v1007_v42  ;;  %vm1043_vm2 = vcmp.lt.f32.partialorder %v2065_v5, 0.0  ;;  %v737_v7 = vadd.f32 0.999866, %v728_v2 }
 0x1c5   :  { %v963_v51 = vadd.f32 -0.3302995, %v954_v26  ;;  %v666_v38 = vmul.f32 %v2341_v1, %v2341_v1  ;;  %v1105_v8 = vadd.f32 %v1096_v53, %v2182_v54  ;;  %v562_v31 = vsel %vm561_vm0, %v2263_v21, %v560_v22 }
 0x1c6   :  { %vm471_vm3 = vcmp.eq.f32.partialorder %v2329_v50, inf  ;;  %vm604_vm9 = vcmp.gt.f32.partialorder %v2338_v40, %v2709_v28  ;;  %v1366_v19 = vpop.eup %1365  ;;  %v1034_v58 = vsel %vm1016_vm11, %v1025_v47, %v1007_v42  ;;  %v746_v52 = vmul.f32 %v737_v7, %v2244_v25 }
 0x1c7   :  { %v972_v20 = vmul.f32 %v963_v51, %v2282_v36  ;;  %v675_v32 = vmul.f32 0.0208351, %v666_v38  ;;  %v2365_v54 = vadd.f32 %v2192_v24, %v1105_v8  ;;  %v2367_v48 = vmul.f32 %v1366_v19, %v856_v3 }
 0x1c8   :  { %vm473_vm8 = vcmp.eq.f32.partialorder %v2329_v50, 0.0  ;;  %v474_v30 = vand.u32 2147483648, %v2329_v50  ;;  %v497_v41 = vmul.f32 %v1602_v61, %v1602_v61  ;;  %v755_v44 = vsub.f32 1.5707964, %v746_v52 }
 0x1c9   :  { %v981_v11 = vadd.f32 0.999866, %v972_v20  ;;  %v684_v55 = vadd.f32 -0.085133, %v675_v32  ;;  %v1052_v25 = vsub.f32 0.0, %v1034_v58  ;;  %v910_v36 = vmul.f32 %v2367_v48, %v2367_v48 }
 0x1ca   :  { %v2379_v24 = vsel %vm563_vm1, %v564_v27, %v562_v31  ;;  %v622_v3 = vsel %vm604_vm9, %v2338_v40, %v2709_v28  ;;  %v764_v4 = vsel %vm602_vm4, %v755_v44, %v746_v52  ;;  %v506_v2 = vmul.f32 %v2373_v37, %v2373_v37  ;;  %v2710_v52 = vld [vmem:[#allocation8_spill] sm:$0xff]  ;;  %v2427_v44 = vpop.permute.xlu0 %378 }
 0x1cb   :  { %v990_v60 = vmul.f32 %v981_v11, %v2270_v10  ;;  %v693_v29 = vmul.f32 %v684_v55, %v666_v38  ;;  %vm631_vm10 = vcmp.eq.f32.partialorder %v622_v3, 0.0  ;;  %v1368_v59 = vpop.eup %1367  ;;  %v782_v6 = vsub.f32 3.1415927, %v764_v4  ;;  %v2711_v11 = vld [vmem:[#allocation7_spill] sm:$0xff] }
 0x1cc   :  { %v919_v39 = vmul.f32 0.0208351, %v910_v36  ;;  %v640_v21 = vsel %vm631_vm10, 1.0, %v622_v3  ;;  %v470_v42 = vmul.f32 %v1368_v59, %v2329_v50  ;;  %v1061_v46 = vsel %vm1043_vm2, %v1052_v25, %v1034_v58  ;;  %v2712_v55 = vld [vmem:[#allocation11_spill] sm:$0xff]  ;;  %v2713_v25 = vld [vmem:[#allocation12_spill] sm:$0xff] }
 0x1cd   :  { %v999_v26 = vsub.f32 1.5707964, %v990_v60  ;;  %v702_v53 = vadd.f32 0.180141, %v693_v29  ;;  %1369 = vrcp.f32 %v640_v21  ;;  %v791_v12 = vsel %vm773_vm6, %v782_v6, %v764_v4 }
 0x1ce   :  { %v928_v10 = vadd.f32 -0.085133, %v919_v39  ;;  %v2398_v22 = vand.u32 2147483647, %v2373_v37  ;;  %v809_v27 = vsub.f32 0.0, %v791_v12  ;;  %v472_v7 = vsel %vm471_vm3, %v2329_v50, %v470_v42 }
 0x1cf   :  { %v711_v47 = vmul.f32 %v702_v53, %v666_v38  ;;  %v2403_v51 = vadd.f32 %v506_v2, %v497_v41  ;;  %vm800_vm4 = vcmp.lt.f32.partialorder %v2080_v56, 0.0  ;;  %v1008_v5 = vsel %vm846_vm12, %v999_v26, %v990_v60  ;;  %v2449_v2 = vpop.permute.xlu1 %398 }
 0x1d0   :  { %v937_v17 = vmul.f32 %v928_v10, %v910_v36  ;;  %v2411_v8 = vsel %vm473_vm8, %v474_v30, %v472_v7  ;;  %v818_v31 = vsel %vm800_vm4, %v809_v27, %v791_v12  ;;  %vm848_vm7 = vcmp.gt.f32.partialorder %v2398_v22, %v1966_v14 }
 0x1d1   :  { %v720_v19 = vadd.f32 -0.3302995, %v711_v47  ;;  %v1072_v58 = vsub.f32 %v2411_v8, %v2379_v24  ;;  %vm1017_vm15 = vcmp.lt.f32.partialorder %v2710_v52, 0.0  ;;  %v1088_v56 = vsub.f32 %v818_v31, %v1061_v46  ;;  %v2714_v46 = vld [vmem:[#allocation13_spill] sm:$0xff] }
 0x1d2   :  { %v946_v20 = vadd.f32 0.180141, %v937_v17  ;;  %v1079_v15 = vand.u32 2147483647, %v1070_v45  ;;  %1371 = vrsqrt.f32 %v2403_v51  ;;  %v866_v50 = vsel %vm848_vm7, %v2398_v22, %v1966_v14 }
 0x1d3   :  { %v729_v62 = vmul.f32 %v720_v19, %v666_v38  ;;  %v1097_v32 = vand.u32 2147483647, %v1088_v56  ;;  %v1026_v30 = vsub.f32 3.1415927, %v1008_v5  ;;  %vm875_vm12 = vcmp.eq.f32.partialorder %v866_v50, 0.0 }
 0x1d4   :  { %v955_v41 = vmul.f32 %v946_v20, %v910_v36  ;;  %vm774_vm14 = vcmp.lt.f32.partialorder %v2711_v11, 0.0  ;;  %v407_v16 = vmul.f32 %v2712_v55, %v2712_v55  ;;  %v2433_v57 = vand.u32 2147483647, %v2712_v55 }
 0x1d5   :  { %v738_v45 = vadd.f32 0.999866, %v729_v62  ;;  %v884_v38 = vsel %vm875_vm12, 1.0, %v866_v50  ;;  %v2436_v3 = vand.u32 2147483647, %v2713_v25  ;;  %v1106_v4 = vadd.f32 %v1097_v32, %v1079_v15 }
 0x1d6   :  { %v964_v60 = vadd.f32 -0.3302995, %v955_v41  ;;  %1373 = vrcp.f32 %v884_v38  ;;  %v613_v6 = vsel %vm604_vm9, %v2709_v28, %v2338_v40  ;;  %v416_v39 = vmul.f32 %v2427_v44, %v2427_v44 }
 0x1d7   :  { %v1370_v29 = vpop.eup %1369  ;;  %v747_v59 = vmul.f32 %v738_v45, %v2341_v1  ;;  %v2447_v21 = vand.u32 2147483647, %v2427_v44  ;;  %v2452_v26 = vadd.f32 %v2365_v54, %v1106_v4  ;;  %v1035_v1 = vsel %vm1017_vm15, %v1026_v30, %v1008_v5 }
 0x1d8   :  { %v973_v53 = vmul.f32 %v964_v60, %v910_v36  ;;  %v2456_v42 = vmul.f32 %v1370_v29, %v613_v6  ;;  %v2459_v12 = vand.u32 2147483647, %v2714_v46  ;;  %v2461_v27 = vadd.f32 %v416_v39, %v407_v16 }
 0x1d9   :  { %v756_v10 = vsub.f32 1.5707964, %v747_v59  ;;  %vm605_vm11 = vcmp.gt.f32.partialorder %v2447_v21, %v2433_v57  ;;  %v507_v7 = vmul.f32 %v2449_v2, %v2449_v2  ;;  %v1053_v5 = vsub.f32 0.0, %v1035_v1 }
 0x1da   :  { %v982_v47 = vadd.f32 0.999866, %v973_v53  ;;  %v667_v54 = vmul.f32 %v2456_v42, %v2456_v42  ;;  %v623_v36 = vsel %vm605_vm11, %v2447_v21, %v2433_v57  ;;  %1375 = vrsqrt.f32 %v2461_v27  ;;  %v2521_v53 = vpop.permute.xlu0 %380 }
 0x1db   :  { %v765_v17 = vsel %vm603_vm5, %v756_v10, %v747_v59  ;;  %v498_v31 = vmul.f32 %v2714_v46, %v2714_v46  ;;  %vm1044_vm0 = vcmp.lt.f32.partialorder %v2124_v13, 0.0  ;;  %v408_v56 = vmul.f32 %v2713_v25, %v2713_v25 }
 0x1dc   :  { %v783_v19 = vsub.f32 3.1415927, %v765_v17  ;;  %v676_v52 = vmul.f32 0.0208351, %v667_v54  ;;  %v1372_v20 = vpop.eup %1371  ;;  %vm801_vm1 = vcmp.lt.f32.partialorder %v2189_v18, 0.0  ;;  %v991_v63 = vmul.f32 %v982_v47, %v2367_v48 }
 0x1dd   :  { %v1080_v35 = vand.u32 2147483647, %v1071_v33  ;;  %vm632_vm5 = vcmp.eq.f32.partialorder %v623_v36, 0.0  ;;  %v857_v13 = vsel %vm848_vm7, %v1966_v14, %v2398_v22  ;;  %v2495_v50 = vadd.f32 %v507_v7, %v498_v31 }
 0x1de   :  { %v792_v15 = vsel %vm774_vm14, %v783_v19, %v765_v17  ;;  %v685_v62 = vadd.f32 -0.085133, %v676_v52  ;;  %v1062_v32 = vsel %vm1044_vm0, %v1053_v5, %v1035_v1  ;;  %v641_v41 = vsel %vm632_vm5, 1.0, %v623_v36 }
 0x1df   :  { %v810_v30 = vsub.f32 0.0, %v792_v15  ;;  %v2498_v0 = vand.u32 2147483647, %v2449_v2  ;;  %v567_v48 = vmul.f32 %v1372_v20, %v2403_v51  ;;  %vm568_vm6 = vcmp.eq.f32.partialorder %v2403_v51, inf }
 0x1e0   :  { %v1374_v49 = vpop.eup %1373  ;;  %v694_v33 = vmul.f32 %v685_v62, %v667_v54  ;;  %1377 = vrcp.f32 %v641_v41  ;;  %v1000_v16 = vsub.f32 1.5707964, %v991_v63  ;;  %vm570_vm3 = vcmp.eq.f32.partialorder %v2403_v51, 0.0 }
 0x1e1   :  { %v819_v11 = vsel %vm801_vm1, %v810_v30, %v792_v15  ;;  %v2504_v45 = vmul.f32 %v1374_v49, %v857_v13  ;;  %vm849_vm2 = vcmp.gt.f32.partialorder %v2498_v0, %v2459_v12  ;;  %1379 = vrsqrt.f32 %v2495_v50 }
 0x1e2   :  { %v1089_v38 = vsub.f32 %v819_v11, %v1062_v32  ;;  %v703_v4 = vadd.f32 0.180141, %v694_v33  ;;  %v867_v60 = vsel %vm849_vm2, %v2498_v0, %v2459_v12  ;;  %v571_v29 = vand.u32 2147483648, %v2403_v51 }
 0x1e3   :  { %v911_v18 = vmul.f32 %v2504_v45, %v2504_v45  ;;  %vm876_vm8 = vcmp.eq.f32.partialorder %v867_v60, 0.0  ;;  %v569_v39 = vsel %vm568_vm6, %v2403_v51, %v567_v48  ;;  %vm478_vm10 = vcmp.eq.f32.partialorder %v2461_v27, inf }
 0x1e4   :  { %v1098_v59 = vand.u32 2147483647, %v1089_v38  ;;  %v712_v6 = vmul.f32 %v703_v4, %v667_v54  ;;  %v885_v1 = vsel %vm876_vm8, 1.0, %v867_v60  ;;  %v1376_v10 = vpop.eup %1375  ;;  %v481_v36 = vand.u32 2147483648, %v2461_v27  ;;  %v2716_v38 = vld [vmem:[#allocation9_spill] sm:$0xff] }
 0x1e5   :  { %v920_v47 = vmul.f32 0.0208351, %v911_v18  ;;  %1381 = vrcp.f32 %v885_v1  ;;  %v1009_v5 = vsel %vm847_vm13, %v1000_v16, %v991_v63  ;;  %v477_v31 = vmul.f32 %v1376_v10, %v2461_v27 }
 0x1e6   :  { %v1107_v7 = vadd.f32 %v1098_v59, %v1080_v35  ;;  %v721_v17 = vadd.f32 -0.3302995, %v712_v6  ;;  %v2531_v52 = vsel %vm570_vm3, %v571_v29, %v569_v39  ;;  %v417_v20 = vmul.f32 %v2521_v53, %v2521_v53 }
 0x1e7   :  { %v929_v19 = vadd.f32 -0.085133, %v920_v47  ;;  %v2536_v15 = vand.u32 2147483647, %v2521_v53  ;;  %v479_v34 = vsel %vm478_vm10, %v2461_v27, %v477_v31  ;;  %vm480_vm13 = vcmp.eq.f32.partialorder %v2461_v27, 0.0 }
 0x1e8   :  { %v2539_v35 = vadd.f32 %v2452_v26, %v1107_v7  ;;  %v730_v62 = vmul.f32 %v721_v17, %v667_v54  ;;  %v1027_v9 = vsub.f32 3.1415927, %v1009_v5  ;;  %v2543_v13 = vsel %vm480_vm13, %v481_v36, %v479_v34 }
 0x1e9   :  { %v938_v63 = vmul.f32 %v929_v19, %v911_v18  ;;  %v2545_v51 = vadd.f32 %v417_v20, %v408_v56  ;;  %v614_v26 = vsel %vm605_vm11, %v2433_v57, %v2447_v21  ;;  %v1073_v54 = vsub.f32 %v2543_v13, %v2531_v52  ;;  %v2715_v56 = vld [vmem:[#allocation10_spill] sm:$0xff] }
 0x1ea   :  { %v1378_v32 = vpop.eup %1377  ;;  %v739_v30 = vadd.f32 0.999866, %v730_v62  ;;  %vm606_vm4 = vcmp.gt.f32.partialorder %v2536_v15, %v2436_v3  ;;  %vm1018_vm15 = vcmp.lt.f32.partialorder %v2715_v56, 0.0  ;;  %vm775_vm12 = vcmp.lt.f32.partialorder %v2716_v38, 0.0 }
 0x1eb   :  { %v947_v41 = vadd.f32 0.180141, %v938_v63  ;;  %v2554_v49 = vmul.f32 %v1378_v32, %v614_v26  ;;  %1383 = vrsqrt.f32 %v2545_v51  ;;  %v1380_v27 = vpop.eup %1379  ;;  %v1036_v48 = vsel %vm1018_vm15, %v1027_v9, %v1009_v5 }
 0x1ec   :  { %v748_v33 = vmul.f32 %v739_v30, %v2456_v42  ;;  %v858_v60 = vsel %vm849_vm2, %v2459_v12, %v2498_v0  ;;  %v624_v42 = vsel %vm606_vm4, %v2536_v15, %v2436_v3  ;;  %v574_v39 = vmul.f32 %v1380_v27, %v2495_v50 }
 0x1ed   :  { %v956_v11 = vmul.f32 %v947_v41, %v911_v18  ;;  %v668_v16 = vmul.f32 %v2554_v49, %v2554_v49  ;;  %vm633_vm14 = vcmp.eq.f32.partialorder %v624_v42, 0.0  ;;  %v1054_v1 = vsub.f32 0.0, %v1036_v48 }
 0x1ee   :  { %v757_v4 = vsub.f32 1.5707964, %v748_v33  ;;  %v642_v36 = vsel %vm633_vm14, 1.0, %v624_v42  ;;  %vm1045_vm0 = vcmp.lt.f32.partialorder %v2212_v23, 0.0  ;;  %vm802_vm1 = vcmp.lt.f32.partialorder %v2300_v43, 0.0 }
 0x1ef   :  { %v1382_v29 = vpop.eup %1381  ;;  %v965_v59 = vadd.f32 -0.3302995, %v956_v11  ;;  %v677_v6 = vmul.f32 0.0208351, %v668_v16  ;;  %1385 = vrcp.f32 %v642_v36  ;;  %vm575_vm5 = vcmp.eq.f32.partialorder %v2495_v50, inf }
 0x1f0   :  { %v766_v10 = vsel %vm604_vm9, %v757_v4, %v748_v33  ;;  %v2578_v47 = vmul.f32 %v1382_v29, %v858_v60  ;;  %v576_v20 = vsel %vm575_vm5, %v2495_v50, %v574_v39  ;;  %v1063_v62 = vsel %vm1045_vm0, %v1054_v1, %v1036_v48 }
 0x1f1   :  { %v784_v7 = vsub.f32 3.1415927, %v766_v10  ;;  %v974_v5 = vmul.f32 %v965_v59, %v911_v18  ;;  %v686_v17 = vadd.f32 -0.085133, %v677_v6  ;;  %v578_v9 = vand.u32 2147483648, %v2495_v50 }
 0x1f2   :  { %v912_v31 = vmul.f32 %v2578_v47, %v2578_v47  ;;  %vm577_vm9 = vcmp.eq.f32.partialorder %v2495_v50, 0.0  ;;  %vm485_vm6 = vcmp.eq.f32.partialorder %v2545_v51, inf  ;;  %v488_v11 = vand.u32 2147483648, %v2545_v51 }
 0x1f3   :  { %v793_v40 = vsel %vm775_vm12, %v784_v7, %v766_v10  ;;  %v983_v28 = vadd.f32 0.999866, %v974_v5  ;;  %v695_v19 = vmul.f32 %v686_v17, %v668_v16  ;;  %v2594_v41 = vsel %vm577_vm9, %v578_v9, %v576_v20 }
 0x1f4   :  { %v811_v18 = vsub.f32 0.0, %v793_v40  ;;  %v921_v34 = vmul.f32 0.0208351, %v912_v31  ;;  %vm487_vm3 = vcmp.eq.f32.partialorder %v2545_v51, 0.0  ;;  %v615_v24 = vsel %vm606_vm4, %v2436_v3, %v2536_v15 }
 0x1f5   :  { %v1384_v23 = vpop.eup %1383  ;;  %v992_v63 = vmul.f32 %v983_v28, %v2504_v45  ;;  %v704_v32 = vadd.f32 0.180141, %v695_v19  ;;  %v1081_v45 = vand.u32 2147483647, %v1072_v58  ;;  %vm776_vm8 = vcmp.lt.f32.partialorder %v2712_v55, 0.0 }
 0x1f6   :  { %v820_v30 = vsel %vm802_vm1, %v811_v18, %v793_v40  ;;  %v930_v26 = vadd.f32 -0.085133, %v921_v34  ;;  %v484_v27 = vmul.f32 %v1384_v23, %v2545_v51  ;;  %vm1046_vm10 = vcmp.lt.f32.partialorder %v2373_v37, 0.0 }
 0x1f7   :  { %v1090_v56 = vsub.f32 %v820_v30, %v1063_v62  ;;  %v1001_v33 = vsub.f32 1.5707964, %v992_v63  ;;  %v713_v48 = vmul.f32 %v704_v32, %v668_v16  ;;  %vm803_vm13 = vcmp.lt.f32.partialorder %v2427_v44, 0.0 }
 0x1f8   :  { %v939_v50 = vmul.f32 %v930_v26, %v912_v31  ;;  %v486_v38 = vsel %vm485_vm6, %v2545_v51, %v484_v27  ;;  %v1082_v55 = vand.u32 2147483647, %v1073_v54  ;;  %vm1047_vm15 = vcmp.lt.f32.partialorder %v2449_v2, 0.0 }
 0x1f9   :  { %v1099_v43 = vand.u32 2147483647, %v1090_v56  ;;  %v1010_v4 = vsel %vm848_vm7, %v1001_v33, %v992_v63  ;;  %v722_v60 = vadd.f32 -0.3302995, %v713_v48  ;;  %v489_v42 = vsel %vm487_vm3, %v488_v11, %v486_v38  ;;  %v1386_v6 = vpop.eup %1385 }
 0x1fa   :  { %v948_v29 = vadd.f32 0.180141, %v939_v50  ;;  %v1074_v59 = vsub.f32 %v489_v42, %v2594_v41  ;;  %v1028_v8 = vsub.f32 3.1415927, %v1010_v4  ;;  %v660_v51 = vmul.f32 %v1386_v6, %v615_v24  ;;  %v1111_v6 = vld [vmem:[#allocation2] sm:$0x1] }
 0x1fb   :  { %v1108_v39 = vadd.f32 %v1099_v43, %v1081_v45  ;;  %v731_v1 = vmul.f32 %v722_v60, %v668_v16  ;;  %vm1019_vm7 = vcmp.lt.f32.partialorder %v1602_v61, 0.0  ;;  %vm804_vm12 = vcmp.lt.f32.partialorder %v2521_v53, 0.0 }
 0x1fc   :  { %v957_v58 = vmul.f32 %v948_v29, %v912_v31  ;;  %v669_v36 = vmul.f32 %v660_v51, %v660_v51  ;;  %v1037_v5 = vsel %vm1019_vm7, %v1028_v8, %v1010_v4  ;;  %v1083_v50 = vand.u32 2147483647, %v1074_v59 }
 0x1fd   :  { %v1117_v14 = vadd.f32 %v2539_v35, %v1108_v39  ;;  %v740_v22 = vadd.f32 0.999866, %v731_v1  ;;  %v1055_v20 = vsub.f32 0.0, %v1037_v5 }
 0x1fe   :  { %v966_v10 = vadd.f32 -0.3302995, %v957_v58  ;;  %v678_v17 = vmul.f32 0.0208351, %v669_v36 }
 0x1ff   :  { %v749_v7 = vmul.f32 %v740_v22, %v2554_v49  ;;  %v1064_v9 = vsel %vm1046_vm10, %v1055_v20, %v1037_v5 }
 0x200   :  { %v975_v16 = vmul.f32 %v966_v10, %v912_v31  ;;  %v687_v19 = vadd.f32 -0.085133, %v678_v17 }
 0x201   :  { %v758_v40 = vsub.f32 1.5707964, %v749_v7 }
 0x202   :  { %v984_v28 = vadd.f32 0.999866, %v975_v16  ;;  %v696_v34 = vmul.f32 %v687_v19, %v669_v36 }
 0x203   :  { %v767_v62 = vsel %vm605_vm11, %v758_v40, %v749_v7  ;;  %vm1020_vm11 = vcmp.lt.f32.partialorder %v2714_v46, 0.0 }
 0x204   :  { %v785_v18 = vsub.f32 3.1415927, %v767_v62  ;;  %v993_v35 = vmul.f32 %v984_v28, %v2578_v47  ;;  %v705_v31 = vadd.f32 0.180141, %v696_v34 }
 0x206   :  { %v794_v61 = vsel %vm776_vm8, %v785_v18, %v767_v62  ;;  %v1002_v49 = vsub.f32 1.5707964, %v993_v35  ;;  %v714_v63 = vmul.f32 %v705_v31, %v669_v36 }
 0x207   :  { %v812_v23 = vsub.f32 0.0, %v794_v61 }
 0x208   :  { %v1011_v57 = vsel %vm849_vm2, %v1002_v49, %v993_v35  ;;  %v723_v21 = vadd.f32 -0.3302995, %v714_v63  ;;  %vm777_vm2 = vcmp.lt.f32.partialorder %v2713_v25, 0.0 }
 0x209   :  { %v821_v32 = vsel %vm803_vm13, %v812_v23, %v794_v61  ;;  %v1029_v26 = vsub.f32 3.1415927, %v1011_v57 }
 0x20a   :  { %v1091_v30 = vsub.f32 %v821_v32, %v1064_v9  ;;  %v732_v47 = vmul.f32 %v723_v21, %v669_v36 }
 0x20b   :  { %v1038_v33 = vsel %vm1020_vm11, %v1029_v26, %v1011_v57 }
 0x20c   :  { %v1100_v37 = vand.u32 2147483647, %v1091_v30  ;;  %v741_v27 = vadd.f32 0.999866, %v732_v47  ;;  %v1056_v11 = vsub.f32 0.0, %v1038_v33 }
 0x20e   :  { %v1109_v41 = vadd.f32 %v1100_v37, %v1082_v55  ;;  %v750_v56 = vmul.f32 %v741_v27, %v660_v51  ;;  %v1065_v13 = vsel %vm1047_vm15, %v1056_v11, %v1038_v33 }
 0x210   :  { %v1118_v44 = vadd.f32 %v1117_v14, %v1109_v41  ;;  %v759_v48 = vsub.f32 1.5707964, %v750_v56 }
 0x212   :  { %v768_v12 = vsel %vm606_vm4, %v759_v48, %v750_v56 }
 0x213   :  { %v786_v0 = vsub.f32 3.1415927, %v768_v12 }
 0x215   :  { %v795_v52 = vsel %vm777_vm2, %v786_v0, %v768_v12 }
 0x216   :  { %v813_v54 = vsub.f32 0.0, %v795_v52 }
 0x218   :  { %v822_v46 = vsel %vm804_vm12, %v813_v54, %v795_v52 }
 0x219   :  { %v1092_v45 = vsub.f32 %v822_v46, %v1065_v13 }
 0x21b   :  { %v1101_v38 = vand.u32 2147483647, %v1092_v45 }
 0x21d   :  { %v1110_v43 = vadd.f32 %v1101_v38, %v1083_v50 }
 0x21f   :  { %v1119_v4 = vadd.f32 %v1118_v44, %v1110_v43 }
 0x221   :  { %v1120_v60 = vrot.slane %v1119_v4, 4 }
 0x223   :  { %v1121_v42 = vadd.f32 %v1120_v60, %v1119_v4 }
 0x225   :  { %v1122_v3 = vrot.slane %v1121_v42, 2 }
 0x227   :  { %v1123_v15 = vadd.f32 %v1122_v3, %v1121_v42 }
 0x229   :  { %v1124_v29 = vrot.slane %v1123_v15, 1 }
 0x22b   :  { %v1125_v25 = vadd.f32 %v1124_v29, %v1123_v15 }
 0x22d   :  { %v1126_v39 = vadd.f32 %v1125_v25, %v1111_v6 }
 0x22f   :  { %1127 = vst [vmem:[#allocation2] sm:$0x1] %v1126_v39 }
 0x236   :  { %v1131_v2 = vld [vmem:[#allocation2] sm:$0x1] }
 0x237   :  { %1132 = vst [vmem:[%s2641_s3] sm:$0x1] %v1131_v2 }

</bundles_post_ra>
